<compile_context>
chip_gen: v6e
topology: v6e:2x2x1
jax: 0.10.0
libtpu: 0.0.40
codegen_flags: <defaults>
</compile_context>

<pallas_src>
import math
import functools

import jax
import jax.numpy as jnp
from jax import lax
from jax.experimental import pallas as pl
from jax.experimental.pallas import tpu as pltpu


# --------------------------------------------------------------------------
# Positional embedding (pure deterministic glue, plain JAX — mirrors the
# PyTorch get_positional_embed / feature functions exactly).
# --------------------------------------------------------------------------
def get_positional_embed(seq_len, feature_size):
    num_components = 6
    if feature_size % num_components != 0:
        raise ValueError("feature size is not divisible by number of components (6)")
    f = feature_size // num_components

    distances = jnp.arange(-seq_len + 1, seq_len, dtype=jnp.float32)   # (2n-1,)
    absd = jnp.abs(distances)[:, None]                                 # (2n-1, 1)

    # exponential
    max_range = math.log(seq_len) / math.log(2.0)
    half_life = 2.0 ** jnp.linspace(3.0, max_range, f)[None, :]
    feat_exp = jnp.exp(-math.log(2.0) / half_life * absd)

    # central mask
    center_widths = 2.0 ** jnp.arange(1, f + 1, dtype=jnp.float32) - 1.0
    feat_cm = (center_widths[None, :] > absd).astype(jnp.float32)

    # gamma
    stddev = seq_len / (2.0 * f)
    start_mean = seq_len / f
    mean = jnp.linspace(start_mean, float(seq_len), f)[None, :]
    concentration = (mean / stddev) ** 2
    rate = mean / stddev ** 2
    log_unnorm = jax.scipy.special.xlogy(concentration - 1.0, absd) - rate * absd
    log_norm = jax.scipy.special.gammaln(concentration) - concentration * jnp.log(rate)
    prob = jnp.exp(log_unnorm - log_norm) + 1e-8
    feat_gamma = prob / jnp.max(prob, axis=-1, keepdims=True)

    emb = jnp.concatenate([feat_exp, feat_cm, feat_gamma], axis=-1)
    emb = jnp.concatenate([emb, jnp.sign(distances)[:, None] * emb], axis=-1)
    return emb                                                          # (2n-1, feature_size)


# --------------------------------------------------------------------------
# One-time probe: verify pltpu.roll's strided (per-sublane shift) convention
# on the running backend so the fast skew can be used safely.
# --------------------------------------------------------------------------
@functools.lru_cache(maxsize=None)
def _strided_roll_matches():
    rows, cols, base = 8, 128, 3

    def kern(x_ref, o_ref):
        o_ref[...] = pltpu.roll(x_ref[...], shift=-base, axis=1,
                                stride=1, stride_axis=0)

    x = jnp.arange(rows * cols, dtype=jnp.float32).reshape(rows, cols)
    want = jnp.stack([jnp.roll(x[r], r - base) for r in range(rows)])
    try:
        got = pl.pallas_call(
            kern, out_shape=jax.ShapeDtypeStruct((rows, cols), jnp.float32))(x)
        return bool(jnp.array_equal(got, want))
    except Exception:
        return False


# --------------------------------------------------------------------------
# Pallas kernel: one (batch, query_tile) step per grid point; heads are a
# static in-kernel loop (all offsets static, one fused output projection).
# --------------------------------------------------------------------------
def _attention_kernel(x_ref, wqkv_ref, relk_ref, cbias_ref, pbias_ref, wo_ref,
                      bo_ref, o_ref, q_sc, k_sc, v_sc, *,
                      num_heads, seq, tq, dk, w_pad, use_roll):
    qt = pl.program_id(1)
    cdt = q_sc.dtype

    # ---- fused QKV projection, cached per batch at query-tile 0 ----
    @pl.when(qt == 0)
    def _():
        for h in range(num_heads):
            qkv = jnp.dot(x_ref[0], wqkv_ref[h],
                          preferred_element_type=jnp.float32)    # (N, 2Dk+Dv) f32
            q_sc[h] = qkv[:, :dk].astype(cdt)                    # Wq pre-scaled host-side
            k_sc[h] = qkv[:, dk:2 * dk].astype(cdt)
            v_sc[h] = qkv[:, 2 * dk:].astype(cdt)

    i0 = pl.multiple_of(qt * tq, tq)                 # first query row of this tile
    start = pl.multiple_of(seq - tq - i0, tq)        # first rel_k row of the window
    contract = (((1,), (1,)), ((), ()))              # A @ B^T

    heads_out = []
    for h in range(num_heads):
        q = q_sc[h, pl.ds(i0, tq), :]                # (TQ, Dk), pre-scaled, cdt
        k = k_sc[h]                                  # (N, Dk)
        v = v_sc[h]                                  # (N, Dv)

        # content logits: (q + content_bias) @ K^T  -> (TQ, N) f32
        logits = lax.dot_general(q + cbias_ref[h], k, contract,
                                 preferred_element_type=jnp.float32)

        # relative logits on the per-tile rel_k window, skewed so that
        # shifted[r, j] = rel[r, j + TQ - 1 - r]  (== reference relative_shift)
        win = relk_ref[h, pl.ds(start, w_pad), :]                       # (Wpad, Dk)
        rel = lax.dot_general(q + pbias_ref[h], win, contract,
                              preferred_element_type=jnp.float32)       # (TQ, Wpad)
        if use_roll:
            # single strided XLU rotation (per-sublane varying lane shift)
            rel = pltpu.roll(rel, shift=-(tq - 1), axis=1,
                             stride=1, stride_axis=0)
        else:
            # TODO(synk): fallback only used if the strided-roll probe fails.
            rel = jnp.concatenate(
                [rel[r:r + 1, tq - 1 - r: tq - 1 - r + seq] for r in range(tq)],
                axis=0)
        logits = logits + rel[:, :seq]

        # ---- softmax in f32 (VPU/EUP), exact normalization ----
        logits = logits - jnp.max(logits, axis=-1, keepdims=True)
        p = jnp.exp(logits)
        attn = (p / jnp.sum(p, axis=-1, keepdims=True)).astype(cdt)

        # attn @ V for this head (bf16 operands, f32 accumulation)
        heads_out.append(
            jnp.dot(attn, v, preferred_element_type=jnp.float32).astype(cdt))

    # ---- single fused output projection over all heads + bias ----
    merged = jnp.concatenate(heads_out, axis=-1)                        # (TQ, H*Dv)
    o_ref[0] = (jnp.dot(merged, wo_ref[...], preferred_element_type=jnp.float32)
                + bo_ref[...]).astype(o_ref.dtype)


def enformer_attention(x, positions, wq, wk, wv, wrel, cbias, pbias, wo, bo, *,
                       scale, tq=None, compute_dtype=jnp.bfloat16):
    B, N, D = x.shape
    H, _, Dk = wq.shape
    Dv = wv.shape[-1]
    L = positions.shape[0]
    assert L == 2 * N - 1

    if tq is None:
        tq = min(N, 128)
    assert N % tq == 0, "sequence length must be divisible by the query tile"
    QT = N // tq

    hp = jax.lax.Precision.HIGHEST
    # Hoisted: rel_k projection depends only on the head, not on (batch, query).
    relk = jnp.einsum('pf,hfk->hpk', positions, wrel, precision=hp)   # (H, L, Dk)

    # Pad the per-tile rel window to a multiple of 128 lanes so the window
    # slice / rel matmul / roll are lane-dense (padded rows are never selected
    # by the skew for columns < N).
    w_len = N + tq - 1
    w_pad = ((w_len + 127) // 128) * 128
    l_pad = (N - tq) + w_pad                        # >= 2N-1 by construction
    relk = jnp.pad(relk, ((0, 0), (0, l_pad - L), (0, 0))).astype(compute_dtype)

    # Fused QKV weights (Wq pre-scaled by `scale`) -> one wide MXU matmul/head.
    wqkv = jnp.concatenate([wq * scale, wk, wv], axis=-1).astype(compute_dtype)
    # Head-concatenated output projection weight: (H*Dv, D).
    wo2 = wo.reshape(H * Dv, D).astype(compute_dtype)

    xk = x.astype(compute_dtype)
    cb = cbias.astype(compute_dtype)
    pb = pbias.astype(compute_dtype)
    bo_f32 = bo.astype(jnp.float32)

    use_roll = _strided_roll_matches() if tq > 1 else False

    kernel = functools.partial(_attention_kernel, num_heads=H, seq=N, tq=tq,
                               dk=Dk, w_pad=w_pad, use_roll=use_roll)

    # Generation-aware VMEM limit (~7/8 of physical capacity: 128 MiB on
    # v5e/v6e, 64 MiB on v7x) instead of a fixed clamp.
    try:
        cap = getattr(pltpu.get_tpu_info(), "vmem_capacity_bytes", None)
        cap = int(cap) if cap else 64 * 2 ** 20
    except Exception:
        cap = 64 * 2 ** 20
    vmem_limit = int(cap * 7 // 8)

    def build(single_buffer_weights):
        def wspec(shape, index_map):
            # Constant-index, fetch-once inputs: no second pipeline buffer.
            if single_buffer_weights:
                return pl.BlockSpec(shape, index_map, pipeline_mode=pl.Buffered(1))
            return pl.BlockSpec(shape, index_map)

        return pl.pallas_call(
            kernel,
            out_shape=jax.ShapeDtypeStruct((B, N, D), jnp.float32),
            grid_spec=pltpu.PrefetchScalarGridSpec(
                num_scalar_prefetch=0,
                grid=(B, QT),
                in_specs=[
                    # x: one full-sequence block per batch (index changes with
                    # b only, so default buffering keeps batch-to-batch overlap).
                    pl.BlockSpec((1, N, D), lambda b, qt: (b, 0, 0)),
                    # Whole-tensor weights, resident across the entire grid.
                    wspec((H, D, 2 * Dk + Dv), lambda b, qt: (0, 0, 0)),  # Wqkv
                    wspec((H, l_pad, Dk), lambda b, qt: (0, 0, 0)),       # rel_k (padded)
                    wspec((H, 1, Dk), lambda b, qt: (0, 0, 0)),           # rel_content_bias
                    wspec((H, 1, Dk), lambda b, qt: (0, 0, 0)),           # rel_pos_bias
                    wspec((H * Dv, D), lambda b, qt: (0, 0)),             # Wo (head-concat)
                    wspec((1, D), lambda b, qt: (0, 0)),                  # bo
                ],
                out_specs=pl.BlockSpec((1, tq, D), lambda b, qt: (b, qt, 0)),
                scratch_shapes=[
                    pltpu.VMEM((H, N, Dk), compute_dtype),   # Q cache (pre-scaled)
                    pltpu.VMEM((H, N, Dk), compute_dtype),   # K cache
                    pltpu.VMEM((H, N, Dv), compute_dtype),   # V cache
                ],
            ),
            compiler_params=pltpu.CompilerParams(
                # batch is genuinely parallel (megacore axis); query tiles are
                # "arbitrary" because the QKV cache is filled at qt == 0.
                dimension_semantics=("parallel", "arbitrary"),
                vmem_limit_bytes=vmem_limit,
            ),
        )

    args = (xk, wqkv, relk, cb, pb, wo2, bo_f32)
    try:
        return build(True)(*args)
    except Exception:
        # Compatibility fallback if pipeline_mode=pl.Buffered(1) is unsupported
        # by the running JAX/Mosaic version.
        return build(False)(*args)


# --------------------------------------------------------------------------
# Pure-JAX reference (literal translation of the PyTorch forward).
# --------------------------------------------------------------------------
def _relative_shift_ref(x):
    to_pad = jnp.zeros_like(x[..., :1])
    x = jnp.concatenate([to_pad, x], axis=-1)
    b, h, t1, t2 = x.shape
    x = x.reshape(b, h, t2, t1)
    x = x[:, :, 1:, :]
    x = x.reshape(b, h, t1, t2 - 1)
    return x[..., :(t2 + 1) // 2]


def reference_attention(x, positions, wq, wk, wv, wrel, cbias, pbias, wo, bo, *, scale):
    hp = jax.lax.Precision.HIGHEST
    q = jnp.einsum('bnd,hdk->bhnk', x, wq, precision=hp) * scale
    k = jnp.einsum('bnd,hdk->bhnk', x, wk, precision=hp)
    v = jnp.einsum('bnd,hdk->bhnk', x, wv, precision=hp)
    content = jnp.einsum('bhik,bhjk->bhij', q + cbias[None], k, precision=hp)
    rel_k = jnp.einsum('pf,hfk->hpk', positions, wrel, precision=hp)
    rel = jnp.einsum('bhik,hpk->bhip', q + pbias[None], rel_k, precision=hp)
    rel = _relative_shift_ref(rel)
    attn = jax.nn.softmax(content + rel, axis=-1)
    out = jnp.einsum('bhij,bhjd->bhid', attn, v, precision=hp)
    return jnp.einsum('bhid,hdo->bio', out, wo, precision=hp) + bo


# --------------------------------------------------------------------------
def _make_inputs(key, *, B, N, D, H, Dk, Dv, P):
    ks = jax.random.split(key, 9)
    x = jax.random.normal(ks[0], (B, N, D), jnp.float32)
    wq = jax.random.normal(ks[1], (H, D, Dk), jnp.float32) / math.sqrt(D)
    wk = jax.random.normal(ks[2], (H, D, Dk), jnp.float32) / math.sqrt(D)
    wv = jax.random.normal(ks[3], (H, D, Dv), jnp.float32) / math.sqrt(D)
    wrel = jax.random.normal(ks[4], (H, P, Dk), jnp.float32) / math.sqrt(P)
    cbias = jax.random.normal(ks[5], (H, 1, Dk), jnp.float32)   # rel_content_bias
    pbias = jax.random.normal(ks[6], (H, 1, Dk), jnp.float32)   # rel_pos_bias
    # NOTE: the PyTorch module zero-inits to_out; deterministic random values
    # are used here so the fused output projection is actually exercised.
    wo = jax.random.normal(ks[7], (H, Dv, D), jnp.float32) / math.sqrt(H * Dv)
    bo = jax.random.normal(ks[8], (1, D), jnp.float32) * 0.1
    positions = get_positional_embed(N, P)                       # (2N-1, P)
    # pos_dropout / attn_dropout with p=0.0 -> identity, omitted.
    return dict(x=x, positions=positions, wq=wq, wk=wk, wv=wv, wrel=wrel,
                cbias=cbias, pbias=pbias, wo=wo, bo=bo, scale=Dk ** -0.5)


def _check_case(key, *, B, N, D, H, Dk, Dv, P, tq, compute_dtype,
                tol=None, fro_tol=None):
    inp = _make_inputs(key, B=B, N=N, D=D, H=H, Dk=Dk, Dv=Dv, P=P)
    out = enformer_attention(**inp, tq=tq, compute_dtype=compute_dtype)
    out = jax.block_until_ready(out)
    ref = reference_attention(**inp)
    assert out.shape == (B, N, D)
    assert bool(jnp.all(jnp.isfinite(out))), "non-finite values in kernel output"
    if tol is not None:
        err = jnp.max(jnp.abs(out - ref))
        assert jnp.allclose(out, ref, atol=tol, rtol=tol), f"max abs err {err}"
    if fro_tol is not None:
        rel = float(jnp.linalg.norm(out - ref) / jnp.linalg.norm(ref))
        assert rel < fro_tol, f"relative Frobenius err {rel}"


if __name__ == "__main__":
    key = jax.random.PRNGKey(0)
    k1, k2, k3 = jax.random.split(key, 3)
    # f32 path, single query tile (tq == N): exact structural parity.
    _check_case(k1, B=2, N=8, D=32, H=2, Dk=16, Dv=16, P=12, tq=8,
                compute_dtype=jnp.float32, tol=5e-3)
    # f32 path, multiple query tiles: exercises the rolled rel-window skew and
    # the per-batch QKV cache being reused across query tiles.
    _check_case(k2, B=1, N=16, D=24, H=3, Dk=8, Dv=12, P=12, tq=8,
                compute_dtype=jnp.float32, tol=5e-3)
    # bf16 MXU-operand path (production default): bf16 operand rounding through
    # exp() makes tight elementwise comparison against the f32 reference
    # meaningless, so only a loose global sanity check is applied here (the
    # f32 cases above validate the structure/indexing exactly).
    _check_case(k3, B=2, N=16, D=32, H=2, Dk=16, Dv=16, P=12, tq=8,
                compute_dtype=jnp.bfloat16, fro_tol=0.25)
    print("KERNEL_OK")
</pallas_src>

<mosaic_0001>
module attributes {stable_mosaic.version = 11 : i64} {
  func.func @_attention_kernel(%arg0: i32, %arg1: i32, %arg2: memref<1x8x32xf32, #tpu.memory_space<vmem>>, %arg3: memref<2x32x48xf32, #tpu.memory_space<vmem>>, %arg4: memref<2x128x16xf32, #tpu.memory_space<vmem>>, %arg5: memref<2x1x16xf32, #tpu.memory_space<vmem>>, %arg6: memref<2x1x16xf32, #tpu.memory_space<vmem>>, %arg7: memref<32x32xf32, #tpu.memory_space<vmem>>, %arg8: memref<1x32xf32, #tpu.memory_space<vmem>>, %arg9: memref<1x8x32xf32, #tpu.memory_space<vmem>>, %arg10: memref<2x8x16xf32, #tpu.memory_space<vmem>>, %arg11: memref<2x8x16xf32, #tpu.memory_space<vmem>>, %arg12: memref<2x8x16xf32, #tpu.memory_space<vmem>>) attributes {dimension_semantics = [#tpu.dimension_semantics<parallel>, #tpu.dimension_semantics<arbitrary>], iteration_bounds = array<i64: 2, 1>, scalar_prefetch = 0 : i64, scratch_operands = 3 : i64, tpu.core_type = #tpu.core_type<tc>, window_params = [{transform_indices = @transform_0, window_bounds = array<i64: 1, 8, 32>}, {pipeline_mode = #tpu.pipeline_mode<synchronous>, transform_indices = @transform_1, window_bounds = array<i64: 2, 32, 48>}, {pipeline_mode = #tpu.pipeline_mode<synchronous>, transform_indices = @transform_2, window_bounds = array<i64: 2, 128, 16>}, {pipeline_mode = #tpu.pipeline_mode<synchronous>, transform_indices = @transform_3, window_bounds = array<i64: 2, 1, 16>}, {pipeline_mode = #tpu.pipeline_mode<synchronous>, transform_indices = @transform_4, window_bounds = array<i64: 2, 1, 16>}, {pipeline_mode = #tpu.pipeline_mode<synchronous>, transform_indices = @transform_5, window_bounds = array<i64: 32, 32>}, {pipeline_mode = #tpu.pipeline_mode<synchronous>, transform_indices = @transform_6, window_bounds = array<i64: 1, 32>}, {transform_indices = @transform_7, window_bounds = array<i64: 1, 8, 32>}]} {
    %c0_i32 = arith.constant 0 : i32
    %0 = arith.cmpi eq, %arg1, %c0_i32 : i32
    %1 = arith.extui %0 : i1 to i32
    %c0_i32_0 = arith.constant 0 : i32
    %2 = arith.cmpi ne, %1, %c0_i32_0 : i32
    scf.if %2 {
      %c0_49 = arith.constant 0 : index
      %c0_50 = arith.constant 0 : index
      %c0_51 = arith.constant 0 : index
      %96 = vector.load %arg2[%c0_49, %c0_50, %c0_51] : memref<1x8x32xf32, #tpu.memory_space<vmem>>, vector<1x8x32xf32>
      %97 = vector.shape_cast %96 : vector<1x8x32xf32> to vector<8x32xf32>
      %c0_52 = arith.constant 0 : index
      %c0_53 = arith.constant 0 : index
      %c0_54 = arith.constant 0 : index
      %98 = vector.load %arg3[%c0_52, %c0_53, %c0_54] : memref<2x32x48xf32, #tpu.memory_space<vmem>>, vector<1x32x48xf32>
      %99 = vector.shape_cast %98 : vector<1x32x48xf32> to vector<32x48xf32>
      %cst_55 = arith.constant dense<0.000000e+00> : vector<8x48xf32>
      %100 = tpu.matmul %97, %99, %cst_55 {dimension_numbers = #tpu.dot_dimension_numbers<[1], [0], [0], [1], [0, 0, 1, 1], [], []>} : vector<8x32xf32>, vector<32x48xf32>, vector<8x48xf32> -> vector<8x48xf32>
      %101 = vector.extract_strided_slice %100 {offsets = [0, 0], sizes = [8, 16], strides = [1, 1]} : vector<8x48xf32> to vector<8x16xf32>
      %c0_56 = arith.constant 0 : index
      %c0_57 = arith.constant 0 : index
      %c0_58 = arith.constant 0 : index
      %102 = vector.load %arg10[%c0_56, %c0_57, %c0_58] : memref<2x8x16xf32, #tpu.memory_space<vmem>>, vector<1x8x16xf32>
      %103 = vector.shape_cast %102 : vector<1x8x16xf32> to vector<8x16xf32>
      %104 = vector.shape_cast %101 : vector<8x16xf32> to vector<1x8x16xf32>
      tpu.vector_store %arg10[%c0_56, %c0_57, %c0_58], %104 {strides = array<i32>} : memref<2x8x16xf32, #tpu.memory_space<vmem>>, vector<1x8x16xf32>,
      %105 = vector.extract_strided_slice %100 {offsets = [0, 16], sizes = [8, 16], strides = [1, 1]} : vector<8x48xf32> to vector<8x16xf32>
      %c0_59 = arith.constant 0 : index
      %c0_60 = arith.constant 0 : index
      %c0_61 = arith.constant 0 : index
      %106 = vector.load %arg11[%c0_59, %c0_60, %c0_61] : memref<2x8x16xf32, #tpu.memory_space<vmem>>, vector<1x8x16xf32>
      %107 = vector.shape_cast %106 : vector<1x8x16xf32> to vector<8x16xf32>
      %108 = vector.shape_cast %105 : vector<8x16xf32> to vector<1x8x16xf32>
      tpu.vector_store %arg11[%c0_59, %c0_60, %c0_61], %108 {strides = array<i32>} : memref<2x8x16xf32, #tpu.memory_space<vmem>>, vector<1x8x16xf32>,
      %109 = vector.extract_strided_slice %100 {offsets = [0, 32], sizes = [8, 16], strides = [1, 1]} : vector<8x48xf32> to vector<8x16xf32>
      %c0_62 = arith.constant 0 : index
      %c0_63 = arith.constant 0 : index
      %c0_64 = arith.constant 0 : index
      %110 = vector.load %arg12[%c0_62, %c0_63, %c0_64] : memref<2x8x16xf32, #tpu.memory_space<vmem>>, vector<1x8x16xf32>
      %111 = vector.shape_cast %110 : vector<1x8x16xf32> to vector<8x16xf32>
      %112 = vector.shape_cast %109 : vector<8x16xf32> to vector<1x8x16xf32>
      tpu.vector_store %arg12[%c0_62, %c0_63, %c0_64], %112 {strides = array<i32>} : memref<2x8x16xf32, #tpu.memory_space<vmem>>, vector<1x8x16xf32>,
      %c0_65 = arith.constant 0 : index
      %c0_66 = arith.constant 0 : index
      %c0_67 = arith.constant 0 : index
      %113 = vector.load %arg2[%c0_65, %c0_66, %c0_67] : memref<1x8x32xf32, #tpu.memory_space<vmem>>, vector<1x8x32xf32>
      %114 = vector.shape_cast %113 : vector<1x8x32xf32> to vector<8x32xf32>
      %c1_68 = arith.constant 1 : index
      %c0_69 = arith.constant 0 : index
      %c0_70 = arith.constant 0 : index
      %115 = vector.load %arg3[%c1_68, %c0_69, %c0_70] : memref<2x32x48xf32, #tpu.memory_space<vmem>>, vector<1x32x48xf32>
      %116 = vector.shape_cast %115 : vector<1x32x48xf32> to vector<32x48xf32>
      %cst_71 = arith.constant dense<0.000000e+00> : vector<8x48xf32>
      %117 = tpu.matmul %114, %116, %cst_71 {dimension_numbers = #tpu.dot_dimension_numbers<[1], [0], [0], [1], [0, 0, 1, 1], [], []>} : vector<8x32xf32>, vector<32x48xf32>, vector<8x48xf32> -> vector<8x48xf32>
      %118 = vector.extract_strided_slice %117 {offsets = [0, 0], sizes = [8, 16], strides = [1, 1]} : vector<8x48xf32> to vector<8x16xf32>
      %c1_72 = arith.constant 1 : index
      %c0_73 = arith.constant 0 : index
      %c0_74 = arith.constant 0 : index
      %119 = vector.load %arg10[%c1_72, %c0_73, %c0_74] : memref<2x8x16xf32, #tpu.memory_space<vmem>>, vector<1x8x16xf32>
      %120 = vector.shape_cast %119 : vector<1x8x16xf32> to vector<8x16xf32>
      %121 = vector.shape_cast %118 : vector<8x16xf32> to vector<1x8x16xf32>
      tpu.vector_store %arg10[%c1_72, %c0_73, %c0_74], %121 {strides = array<i32>} : memref<2x8x16xf32, #tpu.memory_space<vmem>>, vector<1x8x16xf32>,
      %122 = vector.extract_strided_slice %117 {offsets = [0, 16], sizes = [8, 16], strides = [1, 1]} : vector<8x48xf32> to vector<8x16xf32>
      %c1_75 = arith.constant 1 : index
      %c0_76 = arith.constant 0 : index
      %c0_77 = arith.constant 0 : index
      %123 = vector.load %arg11[%c1_75, %c0_76, %c0_77] : memref<2x8x16xf32, #tpu.memory_space<vmem>>, vector<1x8x16xf32>
      %124 = vector.shape_cast %123 : vector<1x8x16xf32> to vector<8x16xf32>
      %125 = vector.shape_cast %122 : vector<8x16xf32> to vector<1x8x16xf32>
      tpu.vector_store %arg11[%c1_75, %c0_76, %c0_77], %125 {strides = array<i32>} : memref<2x8x16xf32, #tpu.memory_space<vmem>>, vector<1x8x16xf32>,
      %126 = vector.extract_strided_slice %117 {offsets = [0, 32], sizes = [8, 16], strides = [1, 1]} : vector<8x48xf32> to vector<8x16xf32>
      %c1_78 = arith.constant 1 : index
      %c0_79 = arith.constant 0 : index
      %c0_80 = arith.constant 0 : index
      %127 = vector.load %arg12[%c1_78, %c0_79, %c0_80] : memref<2x8x16xf32, #tpu.memory_space<vmem>>, vector<1x8x16xf32>
      %128 = vector.shape_cast %127 : vector<1x8x16xf32> to vector<8x16xf32>
      %129 = vector.shape_cast %126 : vector<8x16xf32> to vector<1x8x16xf32>
      tpu.vector_store %arg12[%c1_78, %c0_79, %c0_80], %129 {strides = array<i32>} : memref<2x8x16xf32, #tpu.memory_space<vmem>>, vector<1x8x16xf32>,
    } else {
    }
    %c8_i32 = arith.constant 8 : i32
    %3 = arith.muli %arg1, %c8_i32 : i32
    %4 = tpu.assume_multiple %3, 8 : i32
    %c0_i32_1 = arith.constant 0 : i32
    %5 = arith.subi %c0_i32_1, %4 : i32
    %6 = tpu.assume_multiple %5, 8 : i32
    %c0 = arith.constant 0 : index
    %7 = arith.index_cast %4 : i32 to index
    %c0_2 = arith.constant 0 : index
    %8 = vector.load %arg10[%c0, %7, %c0_2] : memref<2x8x16xf32, #tpu.memory_space<vmem>>, vector<1x8x16xf32>
    %9 = vector.shape_cast %8 : vector<1x8x16xf32> to vector<8x16xf32>
    %c0_3 = arith.constant 0 : index
    %c0_4 = arith.constant 0 : index
    %c0_5 = arith.constant 0 : index
    %10 = vector.load %arg11[%c0_3, %c0_4, %c0_5] : memref<2x8x16xf32, #tpu.memory_space<vmem>>, vector<1x8x16xf32>
    %11 = vector.shape_cast %10 : vector<1x8x16xf32> to vector<8x16xf32>
    %c0_6 = arith.constant 0 : index
    %c0_7 = arith.constant 0 : index
    %c0_8 = arith.constant 0 : index
    %12 = vector.load %arg12[%c0_6, %c0_7, %c0_8] : memref<2x8x16xf32, #tpu.memory_space<vmem>>, vector<1x8x16xf32>
    %13 = vector.shape_cast %12 : vector<1x8x16xf32> to vector<8x16xf32>
    %c0_9 = arith.constant 0 : index
    %c0_10 = arith.constant 0 : index
    %c0_11 = arith.constant 0 : index
    %14 = vector.load %arg5[%c0_9, %c0_10, %c0_11] : memref<2x1x16xf32, #tpu.memory_space<vmem>>, vector<1x1x16xf32>
    %15 = vector.shape_cast %14 : vector<1x1x16xf32> to vector<1x16xf32>
    %16 = vector.broadcast %15 : vector<1x16xf32> to vector<8x16xf32>
    %17 = arith.addf %9, %16 : vector<8x16xf32>
    %cst = arith.constant dense<0.000000e+00> : vector<8x8xf32>
    %18 = tpu.matmul %17, %11, %cst {dimension_numbers = #tpu.dot_dimension_numbers<[1], [1], [0], [0], [0, 0, 1, 0], [], []>} : vector<8x16xf32>, vector<8x16xf32>, vector<8x8xf32> -> vector<8x8xf32>
    %c0_12 = arith.constant 0 : index
    %19 = arith.index_cast %6 : i32 to index
    %c0_13 = arith.constant 0 : index
    %20 = vector.load %arg4[%c0_12, %19, %c0_13] : memref<2x128x16xf32, #tpu.memory_space<vmem>>, vector<1x128x16xf32>
    %21 = vector.shape_cast %20 : vector<1x128x16xf32> to vector<128x16xf32>
    %c0_14 = arith.constant 0 : index
    %c0_15 = arith.constant 0 : index
    %c0_16 = arith.constant 0 : index
    %22 = vector.load %arg6[%c0_14, %c0_15, %c0_16] : memref<2x1x16xf32, #tpu.memory_space<vmem>>, vector<1x1x16xf32>
    %23 = vector.shape_cast %22 : vector<1x1x16xf32> to vector<1x16xf32>
    %24 = vector.broadcast %23 : vector<1x16xf32> to vector<8x16xf32>
    %25 = arith.addf %9, %24 : vector<8x16xf32>
    %cst_17 = arith.constant dense<0.000000e+00> : vector<8x128xf32>
    %26 = tpu.matmul %25, %21, %cst_17 {dimension_numbers = #tpu.dot_dimension_numbers<[1], [1], [0], [0], [0, 0, 1, 0], [], []>} : vector<8x16xf32>, vector<128x16xf32>, vector<8x128xf32> -> vector<8x128xf32>
    %27 = vector.extract_strided_slice %26 {offsets = [0, 7], sizes = [1, 8], strides = [1, 1]} : vector<8x128xf32> to vector<1x8xf32>
    %28 = vector.extract_strided_slice %26 {offsets = [1, 6], sizes = [1, 8], strides = [1, 1]} : vector<8x128xf32> to vector<1x8xf32>
    %29 = vector.extract_strided_slice %26 {offsets = [2, 5], sizes = [1, 8], strides = [1, 1]} : vector<8x128xf32> to vector<1x8xf32>
    %30 = vector.extract_strided_slice %26 {offsets = [3, 4], sizes = [1, 8], strides = [1, 1]} : vector<8x128xf32> to vector<1x8xf32>
    %31 = vector.extract_strided_slice %26 {offsets = [4, 3], sizes = [1, 8], strides = [1, 1]} : vector<8x128xf32> to vector<1x8xf32>
    %32 = vector.extract_strided_slice %26 {offsets = [5, 2], sizes = [1, 8], strides = [1, 1]} : vector<8x128xf32> to vector<1x8xf32>
    %33 = vector.extract_strided_slice %26 {offsets = [6, 1], sizes = [1, 8], strides = [1, 1]} : vector<8x128xf32> to vector<1x8xf32>
    %34 = vector.extract_strided_slice %26 {offsets = [7, 0], sizes = [1, 8], strides = [1, 1]} : vector<8x128xf32> to vector<1x8xf32>
    %35 = tpu.concatenate %27, %28, %29, %30, %31, %32, %33, %34 in 0 : vector<1x8xf32>, vector<1x8xf32>, vector<1x8xf32>, vector<1x8xf32>, vector<1x8xf32>, vector<1x8xf32>, vector<1x8xf32>, vector<1x8xf32> -> vector<8x8xf32>
    %36 = arith.addf %18, %35 : vector<8x8xf32>
    %cst_18 = arith.constant dense<0xFF800000> : vector<8xf32>
    %37 = vector.multi_reduction <maximumf>, %36, %cst_18 [1] : vector<8x8xf32> to vector<8xf32>
    %38 = vector.shape_cast %37 : vector<8xf32> to vector<8x1xf32>
    %39 = vector.broadcast %38 : vector<8x1xf32> to vector<8x8xf32>
    %40 = arith.subf %36, %39 : vector<8x8xf32>
    %41 = math.exp %40 : vector<8x8xf32>
    %cst_19 = arith.constant dense<0.000000e+00> : vector<8xf32>
    %42 = vector.multi_reduction <add>, %41, %cst_19 [1] : vector<8x8xf32> to vector<8xf32>
    %43 = vector.shape_cast %42 : vector<8xf32> to vector<8x1xf32>
    %44 = vector.broadcast %43 : vector<8x1xf32> to vector<8x8xf32>
    %45 = arith.divf %41, %44 : vector<8x8xf32>
    %cst_20 = arith.constant dense<0.000000e+00> : vector<8x16xf32>
    %46 = tpu.matmul %45, %13, %cst_20 {dimension_numbers = #tpu.dot_dimension_numbers<[1], [0], [0], [1], [0, 0, 1, 1], [], []>} : vector<8x8xf32>, vector<8x16xf32>, vector<8x16xf32> -> vector<8x16xf32>
    %c1 = arith.constant 1 : index
    %47 = arith.index_cast %4 : i32 to index
    %c0_21 = arith.constant 0 : index
    %48 = vector.load %arg10[%c1, %47, %c0_21] : memref<2x8x16xf32, #tpu.memory_space<vmem>>, vector<1x8x16xf32>
    %49 = vector.shape_cast %48 : vector<1x8x16xf32> to vector<8x16xf32>
    %c1_22 = arith.constant 1 : index
    %c0_23 = arith.constant 0 : index
    %c0_24 = arith.constant 0 : index
    %50 = vector.load %arg11[%c1_22, %c0_23, %c0_24] : memref<2x8x16xf32, #tpu.memory_space<vmem>>, vector<1x8x16xf32>
    %51 = vector.shape_cast %50 : vector<1x8x16xf32> to vector<8x16xf32>
    %c1_25 = arith.constant 1 : index
    %c0_26 = arith.constant 0 : index
    %c0_27 = arith.constant 0 : index
    %52 = vector.load %arg12[%c1_25, %c0_26, %c0_27] : memref<2x8x16xf32, #tpu.memory_space<vmem>>, vector<1x8x16xf32>
    %53 = vector.shape_cast %52 : vector<1x8x16xf32> to vector<8x16xf32>
    %c1_28 = arith.constant 1 : index
    %c0_29 = arith.constant 0 : index
    %c0_30 = arith.constant 0 : index
    %54 = vector.load %arg5[%c1_28, %c0_29, %c0_30] : memref<2x1x16xf32, #tpu.memory_space<vmem>>, vector<1x1x16xf32>
    %55 = vector.shape_cast %54 : vector<1x1x16xf32> to vector<1x16xf32>
    %56 = vector.broadcast %55 : vector<1x16xf32> to vector<8x16xf32>
    %57 = arith.addf %49, %56 : vector<8x16xf32>
    %cst_31 = arith.constant dense<0.000000e+00> : vector<8x8xf32>
    %58 = tpu.matmul %57, %51, %cst_31 {dimension_numbers = #tpu.dot_dimension_numbers<[1], [1], [0], [0], [0, 0, 1, 0], [], []>} : vector<8x16xf32>, vector<8x16xf32>, vector<8x8xf32> -> vector<8x8xf32>
    %c1_32 = arith.constant 1 : index
    %59 = arith.index_cast %6 : i32 to index
    %c0_33 = arith.constant 0 : index
    %60 = vector.load %arg4[%c1_32, %59, %c0_33] : memref<2x128x16xf32, #tpu.memory_space<vmem>>, vector<1x128x16xf32>
    %61 = vector.shape_cast %60 : vector<1x128x16xf32> to vector<128x16xf32>
    %c1_34 = arith.constant 1 : index
    %c0_35 = arith.constant 0 : index
    %c0_36 = arith.constant 0 : index
    %62 = vector.load %arg6[%c1_34, %c0_35, %c0_36] : memref<2x1x16xf32, #tpu.memory_space<vmem>>, vector<1x1x16xf32>
    %63 = vector.shape_cast %62 : vector<1x1x16xf32> to vector<1x16xf32>
    %64 = vector.broadcast %63 : vector<1x16xf32> to vector<8x16xf32>
    %65 = arith.addf %49, %64 : vector<8x16xf32>
    %cst_37 = arith.constant dense<0.000000e+00> : vector<8x128xf32>
    %66 = tpu.matmul %65, %61, %cst_37 {dimension_numbers = #tpu.dot_dimension_numbers<[1], [1], [0], [0], [0, 0, 1, 0], [], []>} : vector<8x16xf32>, vector<128x16xf32>, vector<8x128xf32> -> vector<8x128xf32>
    %67 = vector.extract_strided_slice %66 {offsets = [0, 7], sizes = [1, 8], strides = [1, 1]} : vector<8x128xf32> to vector<1x8xf32>
    %68 = vector.extract_strided_slice %66 {offsets = [1, 6], sizes = [1, 8], strides = [1, 1]} : vector<8x128xf32> to vector<1x8xf32>
    %69 = vector.extract_strided_slice %66 {offsets = [2, 5], sizes = [1, 8], strides = [1, 1]} : vector<8x128xf32> to vector<1x8xf32>
    %70 = vector.extract_strided_slice %66 {offsets = [3, 4], sizes = [1, 8], strides = [1, 1]} : vector<8x128xf32> to vector<1x8xf32>
    %71 = vector.extract_strided_slice %66 {offsets = [4, 3], sizes = [1, 8], strides = [1, 1]} : vector<8x128xf32> to vector<1x8xf32>
    %72 = vector.extract_strided_slice %66 {offsets = [5, 2], sizes = [1, 8], strides = [1, 1]} : vector<8x128xf32> to vector<1x8xf32>
    %73 = vector.extract_strided_slice %66 {offsets = [6, 1], sizes = [1, 8], strides = [1, 1]} : vector<8x128xf32> to vector<1x8xf32>
    %74 = vector.extract_strided_slice %66 {offsets = [7, 0], sizes = [1, 8], strides = [1, 1]} : vector<8x128xf32> to vector<1x8xf32>
    %75 = tpu.concatenate %67, %68, %69, %70, %71, %72, %73, %74 in 0 : vector<1x8xf32>, vector<1x8xf32>, vector<1x8xf32>, vector<1x8xf32>, vector<1x8xf32>, vector<1x8xf32>, vector<1x8xf32>, vector<1x8xf32> -> vector<8x8xf32>
    %76 = arith.addf %58, %75 : vector<8x8xf32>
    %cst_38 = arith.constant dense<0xFF800000> : vector<8xf32>
    %77 = vector.multi_reduction <maximumf>, %76, %cst_38 [1] : vector<8x8xf32> to vector<8xf32>
    %78 = vector.shape_cast %77 : vector<8xf32> to vector<8x1xf32>
    %79 = vector.broadcast %78 : vector<8x1xf32> to vector<8x8xf32>
    %80 = arith.subf %76, %79 : vector<8x8xf32>
    %81 = math.exp %80 : vector<8x8xf32>
    %cst_39 = arith.constant dense<0.000000e+00> : vector<8xf32>
    %82 = vector.multi_reduction <add>, %81, %cst_39 [1] : vector<8x8xf32> to vector<8xf32>
    %83 = vector.shape_cast %82 : vector<8xf32> to vector<8x1xf32>
    %84 = vector.broadcast %83 : vector<8x1xf32> to vector<8x8xf32>
    %85 = arith.divf %81, %84 : vector<8x8xf32>
    %cst_40 = arith.constant dense<0.000000e+00> : vector<8x16xf32>
    %86 = tpu.matmul %85, %53, %cst_40 {dimension_numbers = #tpu.dot_dimension_numbers<[1], [0], [0], [1], [0, 0, 1, 1], [], []>} : vector<8x8xf32>, vector<8x16xf32>, vector<8x16xf32> -> vector<8x16xf32>
    %87 = tpu.concatenate %46, %86 in 1 : vector<8x16xf32>, vector<8x16xf32> -> vector<8x32xf32>
    %c0_41 = arith.constant 0 : index
    %c0_42 = arith.constant 0 : index
    %88 = vector.load %arg7[%c0_41, %c0_42] : memref<32x32xf32, #tpu.memory_space<vmem>>, vector<32x32xf32>
    %cst_43 = arith.constant dense<0.000000e+00> : vector<8x32xf32>
    %89 = tpu.matmul %87, %88, %cst_43 {dimension_numbers = #tpu.dot_dimension_numbers<[1], [0], [0], [1], [0, 0, 1, 1], [], []>} : vector<8x32xf32>, vector<32x32xf32>, vector<8x32xf32> -> vector<8x32xf32>
    %c0_44 = arith.constant 0 : index
    %c0_45 = arith.constant 0 : index
    %90 = vector.load %arg8[%c0_44, %c0_45] : memref<1x32xf32, #tpu.memory_space<vmem>>, vector<1x32xf32>
    %91 = vector.broadcast %90 : vector<1x32xf32> to vector<8x32xf32>
    %92 = arith.addf %89, %91 : vector<8x32xf32>
    %c0_46 = arith.constant 0 : index
    %c0_47 = arith.constant 0 : index
    %c0_48 = arith.constant 0 : index
    %93 = vector.load %arg9[%c0_46, %c0_47, %c0_48] : memref<1x8x32xf32, #tpu.memory_space<vmem>>, vector<1x8x32xf32>
    %94 = vector.shape_cast %93 : vector<1x8x32xf32> to vector<8x32xf32>
    %95 = vector.shape_cast %92 : vector<8x32xf32> to vector<1x8x32xf32>
    tpu.vector_store %arg9[%c0_46, %c0_47, %c0_48], %95 {strides = array<i32>} : memref<1x8x32xf32, #tpu.memory_space<vmem>>, vector<1x8x32xf32>,
    return
  }
  func.func @transform_0(%arg0: i32, %arg1: i32) -> (i32, i32, i32) {
    %c0_i32 = arith.constant 0 : i32
    %c0_i32_0 = arith.constant 0 : i32
    %c0_i32_1 = arith.constant 0 : i32
    return %arg0, %c0_i32, %c0_i32_0 : i32, i32, i32
  }
  func.func @transform_1(%arg0: i32, %arg1: i32) -> (i32, i32, i32) {
    %c0_i32 = arith.constant 0 : i32
    %c0_i32_0 = arith.constant 0 : i32
    %c0_i32_1 = arith.constant 0 : i32
    %c0_i32_2 = arith.constant 0 : i32
    return %c0_i32, %c0_i32_0, %c0_i32_1 : i32, i32, i32
  }
  func.func @transform_2(%arg0: i32, %arg1: i32) -> (i32, i32, i32) {
    %c0_i32 = arith.constant 0 : i32
    %c0_i32_0 = arith.constant 0 : i32
    %c0_i32_1 = arith.constant 0 : i32
    %c0_i32_2 = arith.constant 0 : i32
    return %c0_i32, %c0_i32_0, %c0_i32_1 : i32, i32, i32
  }
  func.func @transform_3(%arg0: i32, %arg1: i32) -> (i32, i32, i32) {
    %c0_i32 = arith.constant 0 : i32
    %c0_i32_0 = arith.constant 0 : i32
    %c0_i32_1 = arith.constant 0 : i32
    %c0_i32_2 = arith.constant 0 : i32
    return %c0_i32, %c0_i32_0, %c0_i32_1 : i32, i32, i32
  }
  func.func @transform_4(%arg0: i32, %arg1: i32) -> (i32, i32, i32) {
    %c0_i32 = arith.constant 0 : i32
    %c0_i32_0 = arith.constant 0 : i32
    %c0_i32_1 = arith.constant 0 : i32
    %c0_i32_2 = arith.constant 0 : i32
    return %c0_i32, %c0_i32_0, %c0_i32_1 : i32, i32, i32
  }
  func.func @transform_5(%arg0: i32, %arg1: i32) -> (i32, i32) {
    %c0_i32 = arith.constant 0 : i32
    %c0_i32_0 = arith.constant 0 : i32
    %c0_i32_1 = arith.constant 0 : i32
    return %c0_i32, %c0_i32_0 : i32, i32
  }
  func.func @transform_6(%arg0: i32, %arg1: i32) -> (i32, i32) {
    %c0_i32 = arith.constant 0 : i32
    %c0_i32_0 = arith.constant 0 : i32
    %c0_i32_1 = arith.constant 0 : i32
    return %c0_i32, %c0_i32_0 : i32, i32
  }
  func.func @transform_7(%arg0: i32, %arg1: i32) -> (i32, i32, i32) {
    %c0_i32 = arith.constant 0 : i32
    %c0_i32_0 = arith.constant 0 : i32
    return %arg0, %arg1, %c0_i32 : i32, i32, i32
  }
}

module attributes {stable_mosaic.version = 11 : i64} {
  func.func @_attention_kernel(%arg0: i32, %arg1: i32, %arg2: memref<1x8x32xf32, #tpu.memory_space<vmem>>, %arg3: memref<2x32x48xf32, #tpu.memory_space<vmem>>, %arg4: memref<2x128x16xf32, #tpu.memory_space<vmem>>, %arg5: memref<2x1x16xf32, #tpu.memory_space<vmem>>, %arg6: memref<2x1x16xf32, #tpu.memory_space<vmem>>, %arg7: memref<32x32xf32, #tpu.memory_space<vmem>>, %arg8: memref<1x32xf32, #tpu.memory_space<vmem>>, %arg9: memref<1x8x32xf32, #tpu.memory_space<vmem>>, %arg10: memref<2x8x16xf32, #tpu.memory_space<vmem>>, %arg11: memref<2x8x16xf32, #tpu.memory_space<vmem>>, %arg12: memref<2x8x16xf32, #tpu.memory_space<vmem>>) attributes {dimension_semantics = [#tpu.dimension_semantics<parallel>, #tpu.dimension_semantics<arbitrary>], iteration_bounds = array<i64: 2, 1>, scalar_prefetch = 0 : i64, scratch_operands = 3 : i64, tpu.core_type = #tpu.core_type<tc>, window_params = [{transform_indices = @transform_0, window_bounds = array<i64: 1, 8, 32>}, {pipeline_mode = #tpu.pipeline_mode<synchronous>, transform_indices = @transform_1, window_bounds = array<i64: 2, 32, 48>}, {pipeline_mode = #tpu.pipeline_mode<synchronous>, transform_indices = @transform_2, window_bounds = array<i64: 2, 128, 16>}, {pipeline_mode = #tpu.pipeline_mode<synchronous>, transform_indices = @transform_3, window_bounds = array<i64: 2, 1, 16>}, {pipeline_mode = #tpu.pipeline_mode<synchronous>, transform_indices = @transform_4, window_bounds = array<i64: 2, 1, 16>}, {pipeline_mode = #tpu.pipeline_mode<synchronous>, transform_indices = @transform_5, window_bounds = array<i64: 32, 32>}, {pipeline_mode = #tpu.pipeline_mode<synchronous>, transform_indices = @transform_6, window_bounds = array<i64: 1, 32>}, {transform_indices = @transform_7, window_bounds = array<i64: 1, 8, 32>}]} {
    %c0_i32 = arith.constant 0 : i32
    %0 = arith.cmpi eq, %arg1, %c0_i32 : i32
    %1 = arith.extui %0 : i1 to i32
    %c0_i32_0 = arith.constant 0 : i32
    %2 = arith.cmpi ne, %1, %c0_i32_0 : i32
    scf.if %2 {
      %c0_49 = arith.constant 0 : index
      %c0_50 = arith.constant 0 : index
      %c0_51 = arith.constant 0 : index
      %96 = vector.load %arg2[%c0_49, %c0_50, %c0_51] : memref<1x8x32xf32, #tpu.memory_space<vmem>>, vector<1x8x32xf32>
      %97 = vector.shape_cast %96 : vector<1x8x32xf32> to vector<8x32xf32>
      %c0_52 = arith.constant 0 : index
      %c0_53 = arith.constant 0 : index
      %c0_54 = arith.constant 0 : index
      %98 = vector.load %arg3[%c0_52, %c0_53, %c0_54] : memref<2x32x48xf32, #tpu.memory_space<vmem>>, vector<1x32x48xf32>
      %99 = vector.shape_cast %98 : vector<1x32x48xf32> to vector<32x48xf32>
      %cst_55 = arith.constant dense<0.000000e+00> : vector<8x48xf32>
      %100 = tpu.matmul %97, %99, %cst_55 {dimension_numbers = #tpu.dot_dimension_numbers<[1], [0], [0], [1], [0, 0, 1, 1], [], []>} : vector<8x32xf32>, vector<32x48xf32>, vector<8x48xf32> -> vector<8x48xf32>
      %101 = vector.extract_strided_slice %100 {offsets = [0, 0], sizes = [8, 16], strides = [1, 1]} : vector<8x48xf32> to vector<8x16xf32>
      %c0_56 = arith.constant 0 : index
      %c0_57 = arith.constant 0 : index
      %c0_58 = arith.constant 0 : index
      %102 = vector.load %arg10[%c0_56, %c0_57, %c0_58] : memref<2x8x16xf32, #tpu.memory_space<vmem>>, vector<1x8x16xf32>
      %103 = vector.shape_cast %102 : vector<1x8x16xf32> to vector<8x16xf32>
      %104 = vector.shape_cast %101 : vector<8x16xf32> to vector<1x8x16xf32>
      tpu.vector_store %arg10[%c0_56, %c0_57, %c0_58], %104 {strides = array<i32>} : memref<2x8x16xf32, #tpu.memory_space<vmem>>, vector<1x8x16xf32>,
      %105 = vector.extract_strided_slice %100 {offsets = [0, 16], sizes = [8, 16], strides = [1, 1]} : vector<8x48xf32> to vector<8x16xf32>
      %c0_59 = arith.constant 0 : index
      %c0_60 = arith.constant 0 : index
      %c0_61 = arith.constant 0 : index
      %106 = vector.load %arg11[%c0_59, %c0_60, %c0_61] : memref<2x8x16xf32, #tpu.memory_space<vmem>>, vector<1x8x16xf32>
      %107 = vector.shape_cast %106 : vector<1x8x16xf32> to vector<8x16xf32>
      %108 = vector.shape_cast %105 : vector<8x16xf32> to vector<1x8x16xf32>
      tpu.vector_store %arg11[%c0_59, %c0_60, %c0_61], %108 {strides = array<i32>} : memref<2x8x16xf32, #tpu.memory_space<vmem>>, vector<1x8x16xf32>,
      %109 = vector.extract_strided_slice %100 {offsets = [0, 32], sizes = [8, 16], strides = [1, 1]} : vector<8x48xf32> to vector<8x16xf32>
      %c0_62 = arith.constant 0 : index
      %c0_63 = arith.constant 0 : index
      %c0_64 = arith.constant 0 : index
      %110 = vector.load %arg12[%c0_62, %c0_63, %c0_64] : memref<2x8x16xf32, #tpu.memory_space<vmem>>, vector<1x8x16xf32>
      %111 = vector.shape_cast %110 : vector<1x8x16xf32> to vector<8x16xf32>
      %112 = vector.shape_cast %109 : vector<8x16xf32> to vector<1x8x16xf32>
      tpu.vector_store %arg12[%c0_62, %c0_63, %c0_64], %112 {strides = array<i32>} : memref<2x8x16xf32, #tpu.memory_space<vmem>>, vector<1x8x16xf32>,
      %c0_65 = arith.constant 0 : index
      %c0_66 = arith.constant 0 : index
      %c0_67 = arith.constant 0 : index
      %113 = vector.load %arg2[%c0_65, %c0_66, %c0_67] : memref<1x8x32xf32, #tpu.memory_space<vmem>>, vector<1x8x32xf32>
      %114 = vector.shape_cast %113 : vector<1x8x32xf32> to vector<8x32xf32>
      %c1_68 = arith.constant 1 : index
      %c0_69 = arith.constant 0 : index
      %c0_70 = arith.constant 0 : index
      %115 = vector.load %arg3[%c1_68, %c0_69, %c0_70] : memref<2x32x48xf32, #tpu.memory_space<vmem>>, vector<1x32x48xf32>
      %116 = vector.shape_cast %115 : vector<1x32x48xf32> to vector<32x48xf32>
      %cst_71 = arith.constant dense<0.000000e+00> : vector<8x48xf32>
      %117 = tpu.matmul %114, %116, %cst_71 {dimension_numbers = #tpu.dot_dimension_numbers<[1], [0], [0], [1], [0, 0, 1, 1], [], []>} : vector<8x32xf32>, vector<32x48xf32>, vector<8x48xf32> -> vector<8x48xf32>
      %118 = vector.extract_strided_slice %117 {offsets = [0, 0], sizes = [8, 16], strides = [1, 1]} : vector<8x48xf32> to vector<8x16xf32>
      %c1_72 = arith.constant 1 : index
      %c0_73 = arith.constant 0 : index
      %c0_74 = arith.constant 0 : index
      %119 = vector.load %arg10[%c1_72, %c0_73, %c0_74] : memref<2x8x16xf32, #tpu.memory_space<vmem>>, vector<1x8x16xf32>
      %120 = vector.shape_cast %119 : vector<1x8x16xf32> to vector<8x16xf32>
      %121 = vector.shape_cast %118 : vector<8x16xf32> to vector<1x8x16xf32>
      tpu.vector_store %arg10[%c1_72, %c0_73, %c0_74], %121 {strides = array<i32>} : memref<2x8x16xf32, #tpu.memory_space<vmem>>, vector<1x8x16xf32>,
      %122 = vector.extract_strided_slice %117 {offsets = [0, 16], sizes = [8, 16], strides = [1, 1]} : vector<8x48xf32> to vector<8x16xf32>
      %c1_75 = arith.constant 1 : index
      %c0_76 = arith.constant 0 : index
      %c0_77 = arith.constant 0 : index
      %123 = vector.load %arg11[%c1_75, %c0_76, %c0_77] : memref<2x8x16xf32, #tpu.memory_space<vmem>>, vector<1x8x16xf32>
      %124 = vector.shape_cast %123 : vector<1x8x16xf32> to vector<8x16xf32>
      %125 = vector.shape_cast %122 : vector<8x16xf32> to vector<1x8x16xf32>
      tpu.vector_store %arg11[%c1_75, %c0_76, %c0_77], %125 {strides = array<i32>} : memref<2x8x16xf32, #tpu.memory_space<vmem>>, vector<1x8x16xf32>,
      %126 = vector.extract_strided_slice %117 {offsets = [0, 32], sizes = [8, 16], strides = [1, 1]} : vector<8x48xf32> to vector<8x16xf32>
      %c1_78 = arith.constant 1 : index
      %c0_79 = arith.constant 0 : index
      %c0_80 = arith.constant 0 : index
      %127 = vector.load %arg12[%c1_78, %c0_79, %c0_80] : memref<2x8x16xf32, #tpu.memory_space<vmem>>, vector<1x8x16xf32>
      %128 = vector.shape_cast %127 : vector<1x8x16xf32> to vector<8x16xf32>
      %129 = vector.shape_cast %126 : vector<8x16xf32> to vector<1x8x16xf32>
      tpu.vector_store %arg12[%c1_78, %c0_79, %c0_80], %129 {strides = array<i32>} : memref<2x8x16xf32, #tpu.memory_space<vmem>>, vector<1x8x16xf32>,
    } else {
    }
    %c8_i32 = arith.constant 8 : i32
    %3 = arith.muli %arg1, %c8_i32 : i32
    %4 = tpu.assume_multiple %3, 8 : i32
    %c0_i32_1 = arith.constant 0 : i32
    %5 = arith.subi %c0_i32_1, %4 : i32
    %6 = tpu.assume_multiple %5, 8 : i32
    %c0 = arith.constant 0 : index
    %7 = arith.index_cast %4 : i32 to index
    %c0_2 = arith.constant 0 : index
    %8 = vector.load %arg10[%c0, %7, %c0_2] : memref<2x8x16xf32, #tpu.memory_space<vmem>>, vector<1x8x16xf32>
    %9 = vector.shape_cast %8 : vector<1x8x16xf32> to vector<8x16xf32>
    %c0_3 = arith.constant 0 : index
    %c0_4 = arith.constant 0 : index
    %c0_5 = arith.constant 0 : index
    %10 = vector.load %arg11[%c0_3, %c0_4, %c0_5] : memref<2x8x16xf32, #tpu.memory_space<vmem>>, vector<1x8x16xf32>
    %11 = vector.shape_cast %10 : vector<1x8x16xf32> to vector<8x16xf32>
    %c0_6 = arith.constant 0 : index
    %c0_7 = arith.constant 0 : index
    %c0_8 = arith.constant 0 : index
    %12 = vector.load %arg12[%c0_6, %c0_7, %c0_8] : memref<2x8x16xf32, #tpu.memory_space<vmem>>, vector<1x8x16xf32>
    %13 = vector.shape_cast %12 : vector<1x8x16xf32> to vector<8x16xf32>
    %c0_9 = arith.constant 0 : index
    %c0_10 = arith.constant 0 : index
    %c0_11 = arith.constant 0 : index
    %14 = vector.load %arg5[%c0_9, %c0_10, %c0_11] : memref<2x1x16xf32, #tpu.memory_space<vmem>>, vector<1x1x16xf32>
    %15 = vector.shape_cast %14 : vector<1x1x16xf32> to vector<1x16xf32>
    %16 = vector.broadcast %15 : vector<1x16xf32> to vector<8x16xf32>
    %17 = arith.addf %9, %16 : vector<8x16xf32>
    %cst = arith.constant dense<0.000000e+00> : vector<8x8xf32>
    %18 = tpu.matmul %17, %11, %cst {dimension_numbers = #tpu.dot_dimension_numbers<[1], [1], [0], [0], [0, 0, 1, 0], [], []>} : vector<8x16xf32>, vector<8x16xf32>, vector<8x8xf32> -> vector<8x8xf32>
    %c0_12 = arith.constant 0 : index
    %19 = arith.index_cast %6 : i32 to index
    %c0_13 = arith.constant 0 : index
    %20 = vector.load %arg4[%c0_12, %19, %c0_13] : memref<2x128x16xf32, #tpu.memory_space<vmem>>, vector<1x128x16xf32>
    %21 = vector.shape_cast %20 : vector<1x128x16xf32> to vector<128x16xf32>
    %c0_14 = arith.constant 0 : index
    %c0_15 = arith.constant 0 : index
    %c0_16 = arith.constant 0 : index
    %22 = vector.load %arg6[%c0_14, %c0_15, %c0_16] : memref<2x1x16xf32, #tpu.memory_space<vmem>>, vector<1x1x16xf32>
    %23 = vector.shape_cast %22 : vector<1x1x16xf32> to vector<1x16xf32>
    %24 = vector.broadcast %23 : vector<1x16xf32> to vector<8x16xf32>
    %25 = arith.addf %9, %24 : vector<8x16xf32>
    %cst_17 = arith.constant dense<0.000000e+00> : vector<8x128xf32>
    %26 = tpu.matmul %25, %21, %cst_17 {dimension_numbers = #tpu.dot_dimension_numbers<[1], [1], [0], [0], [0, 0, 1, 0], [], []>} : vector<8x16xf32>, vector<128x16xf32>, vector<8x128xf32> -> vector<8x128xf32>
    %27 = vector.extract_strided_slice %26 {offsets = [0, 7], sizes = [1, 8], strides = [1, 1]} : vector<8x128xf32> to vector<1x8xf32>
    %28 = vector.extract_strided_slice %26 {offsets = [1, 6], sizes = [1, 8], strides = [1, 1]} : vector<8x128xf32> to vector<1x8xf32>
    %29 = vector.extract_strided_slice %26 {offsets = [2, 5], sizes = [1, 8], strides = [1, 1]} : vector<8x128xf32> to vector<1x8xf32>
    %30 = vector.extract_strided_slice %26 {offsets = [3, 4], sizes = [1, 8], strides = [1, 1]} : vector<8x128xf32> to vector<1x8xf32>
    %31 = vector.extract_strided_slice %26 {offsets = [4, 3], sizes = [1, 8], strides = [1, 1]} : vector<8x128xf32> to vector<1x8xf32>
    %32 = vector.extract_strided_slice %26 {offsets = [5, 2], sizes = [1, 8], strides = [1, 1]} : vector<8x128xf32> to vector<1x8xf32>
    %33 = vector.extract_strided_slice %26 {offsets = [6, 1], sizes = [1, 8], strides = [1, 1]} : vector<8x128xf32> to vector<1x8xf32>
    %34 = vector.extract_strided_slice %26 {offsets = [7, 0], sizes = [1, 8], strides = [1, 1]} : vector<8x128xf32> to vector<1x8xf32>
    %35 = tpu.concatenate %27, %28, %29, %30, %31, %32, %33, %34 in 0 : vector<1x8xf32>, vector<1x8xf32>, vector<1x8xf32>, vector<1x8xf32>, vector<1x8xf32>, vector<1x8xf32>, vector<1x8xf32>, vector<1x8xf32> -> vector<8x8xf32>
    %36 = arith.addf %18, %35 : vector<8x8xf32>
    %cst_18 = arith.constant dense<0xFF800000> : vector<8xf32>
    %37 = vector.multi_reduction <maximumf>, %36, %cst_18 [1] : vector<8x8xf32> to vector<8xf32>
    %38 = vector.shape_cast %37 : vector<8xf32> to vector<8x1xf32>
    %39 = vector.broadcast %38 : vector<8x1xf32> to vector<8x8xf32>
    %40 = arith.subf %36, %39 : vector<8x8xf32>
    %41 = math.exp %40 : vector<8x8xf32>
    %cst_19 = arith.constant dense<0.000000e+00> : vector<8xf32>
    %42 = vector.multi_reduction <add>, %41, %cst_19 [1] : vector<8x8xf32> to vector<8xf32>
    %43 = vector.shape_cast %42 : vector<8xf32> to vector<8x1xf32>
    %44 = vector.broadcast %43 : vector<8x1xf32> to vector<8x8xf32>
    %45 = arith.divf %41, %44 : vector<8x8xf32>
    %cst_20 = arith.constant dense<0.000000e+00> : vector<8x16xf32>
    %46 = tpu.matmul %45, %13, %cst_20 {dimension_numbers = #tpu.dot_dimension_numbers<[1], [0], [0], [1], [0, 0, 1, 1], [], []>} : vector<8x8xf32>, vector<8x16xf32>, vector<8x16xf32> -> vector<8x16xf32>
    %c1 = arith.constant 1 : index
    %47 = arith.index_cast %4 : i32 to index
    %c0_21 = arith.constant 0 : index
    %48 = vector.load %arg10[%c1, %47, %c0_21] : memref<2x8x16xf32, #tpu.memory_space<vmem>>, vector<1x8x16xf32>
    %49 = vector.shape_cast %48 : vector<1x8x16xf32> to vector<8x16xf32>
    %c1_22 = arith.constant 1 : index
    %c0_23 = arith.constant 0 : index
    %c0_24 = arith.constant 0 : index
    %50 = vector.load %arg11[%c1_22, %c0_23, %c0_24] : memref<2x8x16xf32, #tpu.memory_space<vmem>>, vector<1x8x16xf32>
    %51 = vector.shape_cast %50 : vector<1x8x16xf32> to vector<8x16xf32>
    %c1_25 = arith.constant 1 : index
    %c0_26 = arith.constant 0 : index
    %c0_27 = arith.constant 0 : index
    %52 = vector.load %arg12[%c1_25, %c0_26, %c0_27] : memref<2x8x16xf32, #tpu.memory_space<vmem>>, vector<1x8x16xf32>
    %53 = vector.shape_cast %52 : vector<1x8x16xf32> to vector<8x16xf32>
    %c1_28 = arith.constant 1 : index
    %c0_29 = arith.constant 0 : index
    %c0_30 = arith.constant 0 : index
    %54 = vector.load %arg5[%c1_28, %c0_29, %c0_30] : memref<2x1x16xf32, #tpu.memory_space<vmem>>, vector<1x1x16xf32>
    %55 = vector.shape_cast %54 : vector<1x1x16xf32> to vector<1x16xf32>
    %56 = vector.broadcast %55 : vector<1x16xf32> to vector<8x16xf32>
    %57 = arith.addf %49, %56 : vector<8x16xf32>
    %cst_31 = arith.constant dense<0.000000e+00> : vector<8x8xf32>
    %58 = tpu.matmul %57, %51, %cst_31 {dimension_numbers = #tpu.dot_dimension_numbers<[1], [1], [0], [0], [0, 0, 1, 0], [], []>} : vector<8x16xf32>, vector<8x16xf32>, vector<8x8xf32> -> vector<8x8xf32>
    %c1_32 = arith.constant 1 : index
    %59 = arith.index_cast %6 : i32 to index
    %c0_33 = arith.constant 0 : index
    %60 = vector.load %arg4[%c1_32, %59, %c0_33] : memref<2x128x16xf32, #tpu.memory_space<vmem>>, vector<1x128x16xf32>
    %61 = vector.shape_cast %60 : vector<1x128x16xf32> to vector<128x16xf32>
    %c1_34 = arith.constant 1 : index
    %c0_35 = arith.constant 0 : index
    %c0_36 = arith.constant 0 : index
    %62 = vector.load %arg6[%c1_34, %c0_35, %c0_36] : memref<2x1x16xf32, #tpu.memory_space<vmem>>, vector<1x1x16xf32>
    %63 = vector.shape_cast %62 : vector<1x1x16xf32> to vector<1x16xf32>
    %64 = vector.broadcast %63 : vector<1x16xf32> to vector<8x16xf32>
    %65 = arith.addf %49, %64 : vector<8x16xf32>
    %cst_37 = arith.constant dense<0.000000e+00> : vector<8x128xf32>
    %66 = tpu.matmul %65, %61, %cst_37 {dimension_numbers = #tpu.dot_dimension_numbers<[1], [1], [0], [0], [0, 0, 1, 0], [], []>} : vector<8x16xf32>, vector<128x16xf32>, vector<8x128xf32> -> vector<8x128xf32>
    %67 = vector.extract_strided_slice %66 {offsets = [0, 7], sizes = [1, 8], strides = [1, 1]} : vector<8x128xf32> to vector<1x8xf32>
    %68 = vector.extract_strided_slice %66 {offsets = [1, 6], sizes = [1, 8], strides = [1, 1]} : vector<8x128xf32> to vector<1x8xf32>
    %69 = vector.extract_strided_slice %66 {offsets = [2, 5], sizes = [1, 8], strides = [1, 1]} : vector<8x128xf32> to vector<1x8xf32>
    %70 = vector.extract_strided_slice %66 {offsets = [3, 4], sizes = [1, 8], strides = [1, 1]} : vector<8x128xf32> to vector<1x8xf32>
    %71 = vector.extract_strided_slice %66 {offsets = [4, 3], sizes = [1, 8], strides = [1, 1]} : vector<8x128xf32> to vector<1x8xf32>
    %72 = vector.extract_strided_slice %66 {offsets = [5, 2], sizes = [1, 8], strides = [1, 1]} : vector<8x128xf32> to vector<1x8xf32>
    %73 = vector.extract_strided_slice %66 {offsets = [6, 1], sizes = [1, 8], strides = [1, 1]} : vector<8x128xf32> to vector<1x8xf32>
    %74 = vector.extract_strided_slice %66 {offsets = [7, 0], sizes = [1, 8], strides = [1, 1]} : vector<8x128xf32> to vector<1x8xf32>
    %75 = tpu.concatenate %67, %68, %69, %70, %71, %72, %73, %74 in 0 : vector<1x8xf32>, vector<1x8xf32>, vector<1x8xf32>, vector<1x8xf32>, vector<1x8xf32>, vector<1x8xf32>, vector<1x8xf32>, vector<1x8xf32> -> vector<8x8xf32>
    %76 = arith.addf %58, %75 : vector<8x8xf32>
    %cst_38 = arith.constant dense<0xFF800000> : vector<8xf32>
    %77 = vector.multi_reduction <maximumf>, %76, %cst_38 [1] : vector<8x8xf32> to vector<8xf32>
    %78 = vector.shape_cast %77 : vector<8xf32> to vector<8x1xf32>
    %79 = vector.broadcast %78 : vector<8x1xf32> to vector<8x8xf32>
    %80 = arith.subf %76, %79 : vector<8x8xf32>
    %81 = math.exp %80 : vector<8x8xf32>
    %cst_39 = arith.constant dense<0.000000e+00> : vector<8xf32>
    %82 = vector.multi_reduction <add>, %81, %cst_39 [1] : vector<8x8xf32> to vector<8xf32>
    %83 = vector.shape_cast %82 : vector<8xf32> to vector<8x1xf32>
    %84 = vector.broadcast %83 : vector<8x1xf32> to vector<8x8xf32>
    %85 = arith.divf %81, %84 : vector<8x8xf32>
    %cst_40 = arith.constant dense<0.000000e+00> : vector<8x16xf32>
    %86 = tpu.matmul %85, %53, %cst_40 {dimension_numbers = #tpu.dot_dimension_numbers<[1], [0], [0], [1], [0, 0, 1, 1], [], []>} : vector<8x8xf32>, vector<8x16xf32>, vector<8x16xf32> -> vector<8x16xf32>
    %87 = tpu.concatenate %46, %86 in 1 : vector<8x16xf32>, vector<8x16xf32> -> vector<8x32xf32>
    %c0_41 = arith.constant 0 : index
    %c0_42 = arith.constant 0 : index
    %88 = vector.load %arg7[%c0_41, %c0_42] : memref<32x32xf32, #tpu.memory_space<vmem>>, vector<32x32xf32>
    %cst_43 = arith.constant dense<0.000000e+00> : vector<8x32xf32>
    %89 = tpu.matmul %87, %88, %cst_43 {dimension_numbers = #tpu.dot_dimension_numbers<[1], [0], [0], [1], [0, 0, 1, 1], [], []>} : vector<8x32xf32>, vector<32x32xf32>, vector<8x32xf32> -> vector<8x32xf32>
    %c0_44 = arith.constant 0 : index
    %c0_45 = arith.constant 0 : index
    %90 = vector.load %arg8[%c0_44, %c0_45] : memref<1x32xf32, #tpu.memory_space<vmem>>, vector<1x32xf32>
    %91 = vector.broadcast %90 : vector<1x32xf32> to vector<8x32xf32>
    %92 = arith.addf %89, %91 : vector<8x32xf32>
    %c0_46 = arith.constant 0 : index
    %c0_47 = arith.constant 0 : index
    %c0_48 = arith.constant 0 : index
    %93 = vector.load %arg9[%c0_46, %c0_47, %c0_48] : memref<1x8x32xf32, #tpu.memory_space<vmem>>, vector<1x8x32xf32>
    %94 = vector.shape_cast %93 : vector<1x8x32xf32> to vector<8x32xf32>
    %95 = vector.shape_cast %92 : vector<8x32xf32> to vector<1x8x32xf32>
    tpu.vector_store %arg9[%c0_46, %c0_47, %c0_48], %95 {strides = array<i32>} : memref<1x8x32xf32, #tpu.memory_space<vmem>>, vector<1x8x32xf32>,
    return
  }
  func.func @transform_0(%arg0: i32, %arg1: i32) -> (i32, i32, i32) {
    %c0_i32 = arith.constant 0 : i32
    %c0_i32_0 = arith.constant 0 : i32
    %c0_i32_1 = arith.constant 0 : i32
    return %arg0, %c0_i32, %c0_i32_0 : i32, i32, i32
  }
  func.func @transform_1(%arg0: i32, %arg1: i32) -> (i32, i32, i32) {
    %c0_i32 = arith.constant 0 : i32
    %c0_i32_0 = arith.constant 0 : i32
    %c0_i32_1 = arith.constant 0 : i32
    %c0_i32_2 = arith.constant 0 : i32
    return %c0_i32, %c0_i32_0, %c0_i32_1 : i32, i32, i32
  }
  func.func @transform_2(%arg0: i32, %arg1: i32) -> (i32, i32, i32) {
    %c0_i32 = arith.constant 0 : i32
    %c0_i32_0 = arith.constant 0 : i32
    %c0_i32_1 = arith.constant 0 : i32
    %c0_i32_2 = arith.constant 0 : i32
    return %c0_i32, %c0_i32_0, %c0_i32_1 : i32, i32, i32
  }
  func.func @transform_3(%arg0: i32, %arg1: i32) -> (i32, i32, i32) {
    %c0_i32 = arith.constant 0 : i32
    %c0_i32_0 = arith.constant 0 : i32
    %c0_i32_1 = arith.constant 0 : i32
    %c0_i32_2 = arith.constant 0 : i32
    return %c0_i32, %c0_i32_0, %c0_i32_1 : i32, i32, i32
  }
  func.func @transform_4(%arg0: i32, %arg1: i32) -> (i32, i32, i32) {
    %c0_i32 = arith.constant 0 : i32
    %c0_i32_0 = arith.constant 0 : i32
    %c0_i32_1 = arith.constant 0 : i32
    %c0_i32_2 = arith.constant 0 : i32
    return %c0_i32, %c0_i32_0, %c0_i32_1 : i32, i32, i32
  }
  func.func @transform_5(%arg0: i32, %arg1: i32) -> (i32, i32) {
    %c0_i32 = arith.constant 0 : i32
    %c0_i32_0 = arith.constant 0 : i32
    %c0_i32_1 = arith.constant 0 : i32
    return %c0_i32, %c0_i32_0 : i32, i32
  }
  func.func @transform_6(%arg0: i32, %arg1: i32) -> (i32, i32) {
    %c0_i32 = arith.constant 0 : i32
    %c0_i32_0 = arith.constant 0 : i32
    %c0_i32_1 = arith.constant 0 : i32
    return %c0_i32, %c0_i32_0 : i32, i32
  }
  func.func @transform_7(%arg0: i32, %arg1: i32) -> (i32, i32, i32) {
    %c0_i32 = arith.constant 0 : i32
    %c0_i32_0 = arith.constant 0 : i32
    return %arg0, %arg1, %c0_i32 : i32, i32, i32
  }
}

</mosaic_0001>

<bundles_post_ra>
// kernel: tpu_custom_call.1
= control target key start
LH: loop header
LB: loop body
LE: loop exit
PB: predicated region body
PF: predicated region fallthrough
CT: control target
= control target key end

     0   :  { %12 = vsyncpa [#allocation6], 0  ;;  %s2269_s0 = inlined_call_operand.vmem [shape: f32[2,8,32], index: 0, kind: input, shape index: {}]   ;;  %s2270_s1 = inlined_call_operand.vmem [shape: f32[2,32,48], index: 1, kind: input, shape index: {}]   ;;  %s2271_s2 = inlined_call_operand.vmem [shape: f32[2,128,16], index: 2, kind: input, shape index: {}]   ;;  %s2272_s3 = inlined_call_operand.vmem [shape: f32[2,1,16], index: 3, kind: input, shape index: {}]   ;;  %s2273_s4 = inlined_call_operand.vmem [shape: f32[2,1,16], index: 4, kind: input, shape index: {}]   ;;  %s2274_s5 = inlined_call_operand.vmem [shape: f32[32,32], index: 5, kind: input, shape index: {}]   ;;  %s2275_s6 = inlined_call_operand.vmem [shape: f32[1,32], index: 6, kind: input, shape index: {}]   ;;  %s2276_s7 = inlined_call_operand.hbm [shape: f32[2,8,32], index: 7, kind: output, shape index: {}]  }
   0x1   :  { %14 = vsyncpa [#allocation6 + $0x1], 0  ;;  %s1845_s24 = smov 0   ;;  %s1847_s25 = smov 0  }
   0x2   :  { %s1849_s26 = smov 0   ;;  %s1851_s27 = smov 0  }
   0x3   :  { %s1853_s28 = smov 0   ;;  %s1855_s29 = smov 0  }
   0x4 LB: > { %s1375_s30 = sadd.s32 4294967295, %s1789_s29   ;;  %s1376_s8 = sadd.s32 4294967294, %s1789_s29   ;;  %s1789_s29 = sphi %s1855_s29, %s20_s29   ;;  %s1785_s28 = sphi %s1853_s28, %s2289_s28   ;;  %s1781_s27 = sphi %s1851_s27, %s2288_s27   ;;  %s1777_s26 = sphi %s1849_s26, %s2287_s26   ;;  %s1773_s25 = sphi %s1847_s25, %s2286_s25   ;;  %s1769_s24 = sphi %s1845_s24, %s2285_s24  }
   0x5   : > { %s32_s9 = sadd.s32 1, %s1785_s28  ;;  %s193_s10 = sadd.s32 1, %s1777_s26 }
   0x6   : > { %p34_p0 = scmp.ge.s32.totalorder %s32_s9, 2  ;;  %p203_p1 = scmp.ne.s32.totalorder %s1777_s26, %s1773_s25 }
   0x7   : > { %p204_p2 = scmp.eq.s32.totalorder %s1375_s30, 1  ;;  %p209_p3 = scmp.ne.s32.totalorder %s1773_s25, %s1769_s24 }
   0x8   : > { %s2291_s9 = smov (%p34_p0, %s32_s9), 0  ;;  %p210_p5 = scmp.eq.s32.totalorder %s1376_s8, 1 }
   0x9   : > { %p1885_p4 = por %p204_p2, %p203_p1  ;;  %s188_s12 = ssub.s32 %s1785_s28, %s2291_s9 }
   0xa   : > { %p1379_p6 = scmp.ge.s32.totalorder %s1789_s29, 1  ;;  %p191_p7 = scmp.eq.s32.totalorder %s188_s12, 0 }
   0xb   : > { %p1892_p8 = por %p210_p5, %p209_p3  ;;  %p253_p9 = scmp.lt.s32.totalorder %s1789_s29, 3 }
   0xc   : > { %s1898_s14 = scalar_select %p191_p7, %s1777_s26, %s193_s10  }
   0xd   : > { %p254_p10 = pnand %p1379_p6, %p253_p9 }
   0xe   : > { %p284_p11 = scmp.lt.s32.totalorder (!%p254_p10), %s1781_s27, 1  ;;  %s1793_s16 = smov (!%p254_p10), 112  }
   0xf   : > { %257 = sbr.rel (%p254_p10) target bundleno = 2313 (0x909), region = 48  ;;  %s1794_s21 = smov (!%p254_p10), 2  }
  0x10   : > { %s1796_s23 = smov (!%p254_p10), 3   ;;  %s1797_s30 = smov (!%p254_p10), 4  }
  0x11   : > { %s1798_s8 = smov (!%p254_p10), 5   ;;  %s1799_s10 = smov (!%p254_p10), 6  }
  0x12   : > { %s2278_s15 = smov (!%p254_p10), 121   ;;  %s2277_s17 = smov (!%p254_p10), 96  }
  0x13   : > { %s1803_s20 = smov (!%p254_p10), 16  }
  0x14   : > { %v296_v0 = vld [vmem:[%s2270_s1 + $0x18] sm:$0xff]  ;;  %v1791_v1 = vmov 0.0   ;;  %v295_v2 = vld [vmem:[%s2270_s1 + $0x10] sm:$0xff]  ;;  %vm1792_vm0 = vmmov 0   ;;  %s285_s19 = scalar_select %p284_p11, %s1781_s27, 1  ;;  %v294_v3 = vld [vmem:[%s2270_s1 + $0x8] sm:$0xff] }
  0x15   : > { %1514 = vmatprep.subr.mxu0 %v1791_v1  ;;  %1522 = vmatprep.mubr.msk.f32.mxu0 %vm1792_vm0, %v1791_v1  ;;  %v293_v4 = vld [vmem:[%s2270_s1] sm:$0xff]  ;;  %vm297_vm1 = vcmask 261120   ;;  %vm371_vm2 = vcmask 130048   ;;  %v504_v6 = vld [vmem:[%s2271_s2 + $0x78] sm:$0xff]  ;;  %v503_v7 = vld [vmem:[%s2271_s2 + $0x70] sm:$0xff]  ;;  %vm657_vm3 = vcmask 1040384  }
  0x16   : > { %1515 = vmatpush3.msra.mxu0 %v296_v0  ;;  %1525 = vmatprep.subr.mxu1 %v1791_v1  ;;  %s1381_s22 = sshll.u32 %s285_s19, 3  ;;  %v502_v8 = vld [vmem:[%s2271_s2 + $0x68] sm:$0xff]  ;;  %v501_v9 = vld [vmem:[%s2271_s2 + $0x60] sm:$0xff]  ;;  %v500_v10 = vld [vmem:[%s2271_s2 + $0x58] sm:$0xff]  ;;  %vm659_vm4 = vcmask 1041408   ;;  %vm661_vm5 = vcmask 1042432  }
  0x17   : > { %1516 = vmatprep.subr.mxu0 %v1791_v1  ;;  %1533 = vmatprep.mubr.msk.f32.mxu1 %vm1792_vm0, %v1791_v1  ;;  %s287_s12 = scalar_lea.vmem %s2269_s0, %s1381_s22  ;;  %v499_v11 = vld [vmem:[%s2271_s2 + $0x50] sm:$0xff]  ;;  %v498_v12 = vld [vmem:[%s2271_s2 + $0x48] sm:$0xff]  ;;  %v497_v13 = vld [vmem:[%s2271_s2 + $0x40] sm:$0xff]  ;;  %s1795_s22 = smov 1   ;;  %vm663_vm6 = vcmask 1043456   ;;  %vm665_vm7 = vcmask 1044480  }
  0x18   : > { %1517 = vmatpush3.msra.mxu0 %v295_v2  ;;  %v1925_v5 = vld [vmem:[%s287_s12] sm:$0xff]  ;;  %v496_v14 = vld [vmem:[%s2271_s2 + $0x38] sm:$0xff]  ;;  %v495_v15 = vld [vmem:[%s2271_s2 + $0x30] sm:$0xff]  ;;  %s2279_s12 = smov 7   ;;  %vm667_vm8 = vcmask 1045504   ;;  %vm669_vm9 = vcmask 1046528  }
  0x19   : > { %1518 = vmatprep.subr.mxu0 %v1791_v1  ;;  %v494_v16 = vld [vmem:[%s2271_s2 + $0x28] sm:$0xff]  ;;  %v493_v17 = vld [vmem:[%s2271_s2 + $0x20] sm:$0xff]  ;;  %v492_v18 = vld [vmem:[%s2271_s2 + $0x18] sm:$0xff]  ;;  %vm751_vm10 = vcmask 64512  }
  0x1a   : > { %1519 = vmatpush3.msra.mxu0 %v294_v3  ;;  %v491_v19 = vld [vmem:[%s2271_s2 + $0x10] sm:$0xff]  ;;  %v490_v20 = vld [vmem:[%s2271_s2 + $0x8] sm:$0xff]  ;;  %v489_v21 = vld [vmem:[%s2271_s2] sm:$0xff] }
  0x1b   : > { %1520 = vmatprep.subr.mxu0 %v1791_v1  ;;  %v1386_v22 = vld [vmem:[%s2270_s1 + $0x38] sm:$0xff]  ;;  %v1385_v23 = vld [vmem:[%s2270_s1 + $0x30] sm:$0xff]  ;;  %v1384_v24 = vld [vmem:[%s2270_s1 + $0x28] sm:$0xff] }
  0x1c   : > { %1521 = vmatpush3.msra.mxu0 %v293_v4  ;;  %1526 = vmatpush3.msra.mxu1 %v1386_v22  ;;  %v1383_v25 = vld [vmem:[%s2270_s1 + $0x20] sm:$0xff] }
  0x1d   : > { %1523 = vmatmul.mubr.msk.f32.vlgmr.msra.gmra.mxu0 %vm297_vm1, %v1925_v5  ;;  %1536 = vmatprep.subr.mxu0 %v1791_v1  ;;  %v1389_v28 = vld [vmem:[%s2273_s4] ss:$0 sm:$0xff] }
  0x1e   : > { %1537 = vmatpush3.xpose.msk.msra.mxu0 %vm371_vm2, %v504_v6  ;;  %1568 = vmatprep.mubr.msk.f32.mxu0 %vm1792_vm0, %v1791_v1  ;;  %v1388_v32 = vld [vmem:[%s2272_s3] ss:$0 sm:$0xff]  ;;  %v1428_v6 = vld [vmem:[%s2271_s2 + $0xf8] sm:$0xff] }
  0x1f   : > { %1538 = vmatprep.subr.mxu0 %v1791_v1  ;;  %1527 = vmatprep.subr.mxu1 %v1791_v1 }
  0x20   : > { %1528 = vmatpush3.msra.mxu1 %v1385_v23  ;;  %v1430_v23 = vld [vmem:[%s2273_s4 + $0x1] ss:$0 sm:$0xff] }
  0x21   : > { %1529 = vmatprep.subr.mxu1 %v1791_v1 }
  0x22   : > { %1539 = vmatpush3.xpose.msk.msra.mxu0 %vm371_vm2, %v503_v7  ;;  %1530 = vmatpush3.msra.mxu1 %v1384_v24  ;;  %v1427_v7 = vld [vmem:[%s2271_s2 + $0xf0] sm:$0xff] }
  0x23   : > { %1540 = vmatprep.subr.mxu0 %v1791_v1  ;;  %1531 = vmatprep.subr.mxu1 %v1791_v1 }
  0x24   : > { %1532 = vmatpush3.msra.mxu1 %v1383_v25  ;;  %v1412_v25 = vld [vmem:[%s2272_s3 + $0x1] ss:$0 sm:$0xff] }
  0x25   : > { %1534 = vmatmul.mubr.msk.f32.vlgmr.msra.gmra.mxu1 %vm297_vm1, %v1925_v5  ;;  %1571 = vmatprep.subr.mxu1 %v1791_v1 }
  0x26   : > { %1541 = vmatpush3.xpose.msk.msra.mxu0 %vm371_vm2, %v502_v8  ;;  %1573 = vmatprep.mubr.msk.f32.mxu1 %vm1792_vm0, %v1791_v1  ;;  %v1426_v8 = vld [vmem:[%s2271_s2 + $0xe8] sm:$0xff] }
  0x27   : > { %1542 = vmatprep.subr.mxu0 %v1791_v1 }
  0x2a   : > { %1543 = vmatpush3.xpose.msk.msra.mxu0 %vm371_vm2, %v501_v9  ;;  %v1425_v9 = vld [vmem:[%s2271_s2 + $0xe0] sm:$0xff] }
  0x2b   : > { %1544 = vmatprep.subr.mxu0 %v1791_v1 }
  0x2e   : > { %1545 = vmatpush3.xpose.msk.msra.mxu0 %vm371_vm2, %v500_v10  ;;  %v1424_v10 = vld [vmem:[%s2271_s2 + $0xd8] sm:$0xff] }
  0x2f   : > { %1546 = vmatprep.subr.mxu0 %v1791_v1 }
  0x32   : > { %1547 = vmatpush3.xpose.msk.msra.mxu0 %vm371_vm2, %v499_v11  ;;  %v1423_v11 = vld [vmem:[%s2271_s2 + $0xd0] sm:$0xff] }
  0x33   : > { %1548 = vmatprep.subr.mxu0 %v1791_v1 }
  0x36   : > { %1549 = vmatpush3.xpose.msk.msra.mxu0 %vm371_vm2, %v498_v12  ;;  %v1422_v12 = vld [vmem:[%s2271_s2 + $0xc8] sm:$0xff] }
  0x37   : > { %1550 = vmatprep.subr.mxu0 %v1791_v1 }
  0x3a   : > { %1551 = vmatpush3.xpose.msk.msra.mxu0 %vm371_vm2, %v497_v13  ;;  %v1421_v13 = vld [vmem:[%s2271_s2 + $0xc0] sm:$0xff] }
  0x3b   : > { %1552 = vmatprep.subr.mxu0 %v1791_v1 }
  0x3e   : > { %1553 = vmatpush3.xpose.msk.msra.mxu0 %vm371_vm2, %v496_v14  ;;  %v1420_v14 = vld [vmem:[%s2271_s2 + $0xb8] sm:$0xff] }
  0x3f   : > { %1554 = vmatprep.subr.mxu0 %v1791_v1 }
  0x42   : > { %1555 = vmatpush3.xpose.msk.msra.mxu0 %vm371_vm2, %v495_v15  ;;  %v1419_v15 = vld [vmem:[%s2271_s2 + $0xb0] sm:$0xff] }
  0x43   : > { %1556 = vmatprep.subr.mxu0 %v1791_v1 }
  0x46   : > { %1557 = vmatpush3.xpose.msk.msra.mxu0 %vm371_vm2, %v494_v16  ;;  %v1418_v16 = vld [vmem:[%s2271_s2 + $0xa8] sm:$0xff] }
  0x47   : > { %1558 = vmatprep.subr.mxu0 %v1791_v1 }
  0x4a   : > { %1559 = vmatpush3.xpose.msk.msra.mxu0 %vm371_vm2, %v493_v17  ;;  %v1417_v17 = vld [vmem:[%s2271_s2 + $0xa0] sm:$0xff] }
  0x4b   : > { %1560 = vmatprep.subr.mxu0 %v1791_v1 }
  0x4e   : > { %1561 = vmatpush3.xpose.msk.msra.mxu0 %vm371_vm2, %v492_v18  ;;  %v1416_v18 = vld [vmem:[%s2271_s2 + $0x98] sm:$0xff] }
  0x4f   : > { %1562 = vmatprep.subr.mxu0 %v1791_v1 }
  0x52   : > { %1563 = vmatpush3.xpose.msk.msra.mxu0 %vm371_vm2, %v491_v19  ;;  %v1415_v19 = vld [vmem:[%s2271_s2 + $0x90] sm:$0xff] }
  0x53   : > { %1564 = vmatprep.subr.mxu0 %v1791_v1 }
  0x56   : > { %1565 = vmatpush3.xpose.msk.msra.mxu0 %vm371_vm2, %v490_v20  ;;  %v1414_v20 = vld [vmem:[%s2271_s2 + $0x88] sm:$0xff] }
  0x57   : > { %1566 = vmatprep.subr.mxu0 %v1791_v1 }
  0x5a   : > { %1567 = vmatpush3.xpose.msk.msra.mxu0 %vm371_vm2, %v489_v21  ;;  %v1413_v21 = vld [vmem:[%s2271_s2 + $0x80] sm:$0xff] }
  0x5b   : > { %1621 = vmatprep.subr.mxu0 %v1791_v1 }
  0xdd   : > { %v2033_v26 = vpop.f32.mrf.mxu0 }
  0xde   : > { %372 = vst.msk [vmem:[#allocation2] sm:$0xff] %vm371_vm2, %v2033_v26  ;;  %374 = vrot.lane.b32.xlu0 %v2033_v26, %s1793_s16 }
  0xdf   : > { %v1524_v27 = vpop.f32.mrf.mxu0 }
  0xe5   : > { %v477_v29 = vld [vmem:[#allocation2] sm:$0xff]  ;;  %v2054_v35 = vpop.f32.mrf.mxu1 }
  0xe6   : > { %v512_v30 = vadd.f32 %v1389_v28, %v477_v29  ;;  %v487_v34 = vadd.f32 %v1388_v32, %v477_v29  ;;  %462 = vst.msk [vmem:[#allocation2 + $0x8] sm:$0xff] %vm371_vm2, %v2054_v35 }
  0xe7   : > { %v1535_v36 = vpop.f32.mrf.mxu1 }
  0xe8   : > { %1569 = vmatmul.mubr.msk.f32.vlgmr.msra.gmra.mxu0 %vm371_vm2, %v512_v30 }
  0xe9   : > { %1623 = vmatprep.mubr.msk.f32.mxu0 %vm1792_vm0, %v1791_v1 }
  0xed   : > { %v1410_v22 = vld [vmem:[#allocation2 + $0x8] sm:$0xff] }
  0xee   : > { %v878_v24 = vadd.f32 %v1430_v23, %v1410_v22  ;;  %v851_v27 = vadd.f32 %v1412_v25, %v1410_v22 }
 0x150   : > { %v375_v31 = vpop.permute.xlu0 %374 }
 0x151   : > { %377 = vst.msk [vmem:[#allocation3] sm:$0xff] %vm371_vm2, %v375_v31 }
 0x158   : > { %v478_v33 = vld [vmem:[#allocation3] sm:$0xff] }
 0x159   : > { %1572 = vmatpush3.xpose.msk.msra.mxu1 %vm371_vm2, %v478_v33 }
 0x15a   : > { %1576 = vmatprep.subr.mxu1 %v1791_v1 }
 0x15c   : > { %1574 = vmatmul.mubr.msk.f32.vlgmr.msra.gmra.mxu1 %vm371_vm2, %v487_v34 }
 0x15d   : > { %1578 = vmatprep.mubr.msk.f32.mxu1 %vm1792_vm0, %v1791_v1 }
 0x1a8   : > { %v631_v37 = vpop.f32.mrf.mxu0 }
 0x1a9   : > { %639 = vrot.lane.b32.xlu1 %v631_v37, %s1794_s21  ;;  %636 = vrot.lane.b32.xlu0 %v631_v37, %s1795_s22 }
 0x1aa   : > { %v1570_v38 = vpop.f32.mrf.mxu0 }
 0x1ad   : > { %642 = vrot.lane.b32.xlu1 %v631_v37, %s1796_s23  ;;  %645 = vrot.lane.b32.xlu0 %v631_v37, %s1797_s30 }
 0x1b1   : > { %648 = vrot.lane.b32.xlu1 %v631_v37, %s1798_s8  ;;  %651 = vrot.lane.b32.xlu0 %v631_v37, %s1799_s10 }
 0x1b5   : > { %654 = vrot.lane.b32.xlu1 %v631_v37, %s2279_s12  ;;  %s2282_s12 = smov 7  }
 0x21b   : > { %v640_v39 = vpop.permute.xlu1 %639  ;;  %v637_v40 = vpop.permute.xlu0 %636 }
 0x21c   : > { %v658_v41 = vsel %vm657_vm3, %v631_v37, %v637_v40  ;;  %v747_v42 = vpop.f32.mrf.mxu1 }
 0x21d   : > { %v660_v45 = vsel %vm659_vm4, %v658_v41, %v640_v39 }
 0x21e   : > { %v1575_v43 = vpop.f32.mrf.mxu1 }
 0x21f   : > { %v643_v44 = vpop.permute.xlu1 %642  ;;  %v646_v46 = vpop.permute.xlu0 %645 }
 0x220   : > { %v662_v47 = vsel %vm661_vm5, %v660_v45, %v643_v44 }
 0x221   : > { %v664_v48 = vsel %vm663_vm6, %v662_v47, %v646_v46 }
 0x223   : > { %v649_v49 = vpop.permute.xlu1 %648  ;;  %v652_v51 = vpop.permute.xlu0 %651 }
 0x224   : > { %v666_v50 = vsel %vm665_vm7, %v664_v48, %v649_v49 }
 0x225   : > { %v668_v52 = vsel %vm667_vm8, %v666_v50, %v652_v51 }
 0x227   : > { %v655_v53 = vpop.permute.xlu1 %654 }
 0x228   : > { %v670_v54 = vsel %vm669_vm9, %v668_v52, %v655_v53 }
 0x229   : > { %672 = vrot.lane.b32.xlu0 %v670_v54, %s2278_s15 }
 0x29b   : > { %v673_v55 = vpop.permute.xlu0 %672 }
 0x29c   : > { %v748_v56 = vadd.f32 %v747_v42, %v673_v55 }
 0x29e   : > { %v752_v57 = vsel %vm751_vm10, %v748_v56, -inf }
 0x29f   : > { %753 = vmax.xlane.f32.xlu1 %v752_v57 }
 0x2b0   : > { %464 = vrot.lane.b32.xlu1 %v2054_v35, %s1793_s16 }
 0x328   : > { %v754_v58 = vpop.xlane.xlu1 %753 }
 0x329   : > { %v755_v59 = vsub.f32 %v748_v56, %v754_v58 }
 0x32b   : > { %v756_v60 = vmul.f32 1.442695, %v755_v59 }
 0x32c   : > { %v465_v61 = vpop.permute.xlu1 %464 }
 0x32d   : > { %1705 = vpow2.f32 %v756_v60  ;;  %468 = vst.msk [vmem:[#allocation3 + $0x8] sm:$0xff] %vm371_vm2, %v465_v61 }
 0x33a   : > { %v1706_v62 = vpop.eup %1705 }
 0x33b   : > { %v758_v63 = vsel %vm751_vm10, %v1706_v62, 0.0 }
 0x33c   : > { %759 = vadd.xlane.f32.xlu0 %v758_v63  ;;  %v1199_v63 = vld [vmem:[%s2274_s5 + $0x8] sm:$0xff] }
 0x352   : > { %378 = vrot.lane.b32.xlu0 %v2033_v26, %s2277_s17  ;;  %v840_v26 = vld [vmem:[#allocation3 + $0x8] sm:$0xff]  ;;  %s281_s17 = sand.u32 1, %s1773_s25  }
 0x353   : > { %s1285_s18 = scalar_lea.sflag [#allocation6], %s281_s17 }
 0x3c5   : > { %v760_v0 = vpop.xlane.xlu0 %759 }
 0x3c6   : > { %1707 = vrcp.f32 %v760_v0  ;;  %v1198_v0 = vld [vmem:[%s2274_s5] sm:$0xff] }
 0x3c9   : > { %v379_v2 = vpop.permute.xlu0 %378 }
 0x3ca   : > { %381 = vst.msk [vmem:[#allocation4] sm:$0xff] %vm371_vm2, %v379_v2 }
 0x3d1   : > { %v479_v3 = vld [vmem:[#allocation4] sm:$0xff] }
 0x3d2   : > { %1577 = vmatpush3.msra.mxu1 %v479_v3 }
 0x3d3   : > { %v1708_v4 = vpop.eup %1707  ;;  %1581 = vmatprep.subr.mxu1 %v1791_v1 }
 0x3d4   : > { %v762_v5 = vmul.f32 %v1708_v4, %v1706_v62  ;;  %v1200_v62 = vld [vmem:[%s2274_s5 + $0x10] sm:$0xff] }
 0x3d6   : > { %1579 = vmatmul.mubr.msk.f32.vlgmr.msra.gmra.mxu1 %vm751_vm10, %v762_v5 }
 0x3d7   : > { %1582 = vmatpush3.xpose.msk.msra.mxu1 %vm371_vm2, %v1428_v6  ;;  %1613 = vmatprep.mubr.msk.f32.mxu1 %vm1792_vm0, %v1791_v1 }
 0x3d8   : > { %1583 = vmatprep.subr.mxu1 %v1791_v1 }
 0x3db   : > { %1584 = vmatpush3.xpose.msk.msra.mxu1 %vm371_vm2, %v1427_v7 }
 0x3dc   : > { %1585 = vmatprep.subr.mxu1 %v1791_v1 }
 0x3df   : > { %1586 = vmatpush3.xpose.msk.msra.mxu1 %vm371_vm2, %v1426_v8 }
 0x3e0   : > { %1587 = vmatprep.subr.mxu1 %v1791_v1 }
 0x3e3   : > { %1588 = vmatpush3.xpose.msk.msra.mxu1 %vm371_vm2, %v1425_v9 }
 0x3e4   : > { %1589 = vmatprep.subr.mxu1 %v1791_v1 }
 0x3e7   : > { %1590 = vmatpush3.xpose.msk.msra.mxu1 %vm371_vm2, %v1424_v10 }
 0x3e8   : > { %1591 = vmatprep.subr.mxu1 %v1791_v1 }
 0x3eb   : > { %1592 = vmatpush3.xpose.msk.msra.mxu1 %vm371_vm2, %v1423_v11 }
 0x3ec   : > { %1593 = vmatprep.subr.mxu1 %v1791_v1 }
 0x3ef   : > { %1594 = vmatpush3.xpose.msk.msra.mxu1 %vm371_vm2, %v1422_v12 }
 0x3f0   : > { %1595 = vmatprep.subr.mxu1 %v1791_v1 }
 0x3f3   : > { %1596 = vmatpush3.xpose.msk.msra.mxu1 %vm371_vm2, %v1421_v13 }
 0x3f4   : > { %1597 = vmatprep.subr.mxu1 %v1791_v1 }
 0x3f7   : > { %1598 = vmatpush3.xpose.msk.msra.mxu1 %vm371_vm2, %v1420_v14 }
 0x3f8   : > { %1599 = vmatprep.subr.mxu1 %v1791_v1 }
 0x3fb   : > { %1600 = vmatpush3.xpose.msk.msra.mxu1 %vm371_vm2, %v1419_v15 }
 0x3fc   : > { %1601 = vmatprep.subr.mxu1 %v1791_v1 }
 0x3ff   : > { %1602 = vmatpush3.xpose.msk.msra.mxu1 %vm371_vm2, %v1418_v16 }
 0x400   : > { %1603 = vmatprep.subr.mxu1 %v1791_v1 }
 0x403   : > { %1604 = vmatpush3.xpose.msk.msra.mxu1 %vm371_vm2, %v1417_v17 }
 0x404   : > { %1605 = vmatprep.subr.mxu1 %v1791_v1 }
 0x407   : > { %1606 = vmatpush3.xpose.msk.msra.mxu1 %vm371_vm2, %v1416_v18 }
 0x408   : > { %1607 = vmatprep.subr.mxu1 %v1791_v1 }
 0x40b   : > { %1608 = vmatpush3.xpose.msk.msra.mxu1 %vm371_vm2, %v1415_v19 }
 0x40c   : > { %1609 = vmatprep.subr.mxu1 %v1791_v1 }
 0x40f   : > { %1610 = vmatpush3.xpose.msk.msra.mxu1 %vm371_vm2, %v1414_v20 }
 0x410   : > { %1611 = vmatprep.subr.mxu1 %v1791_v1 }
 0x413   : > { %1612 = vmatpush3.xpose.msk.msra.mxu1 %vm371_vm2, %v1413_v21 }
 0x414   : > { %1616 = vmatprep.subr.mxu1 %v1791_v1 }
 0x416   : > { %1614 = vmatmul.mubr.msk.f32.vlgmr.msra.gmra.mxu1 %vm371_vm2, %v878_v24 }
 0x417   : > { %1617 = vmatpush3.xpose.msk.msra.mxu1 %vm371_vm2, %v840_v26  ;;  %1618 = vmatprep.mubr.msk.f32.mxu1 %vm1792_vm0, %v1791_v1 }
 0x41a   : > { %1619 = vmatmul.mubr.msk.f32.vlgmr.msra.gmra.mxu1 %vm371_vm2, %v851_v27 }
 0x496   : > { %v2176_v28 = vpop.f32.mrf.mxu1 }
 0x498   : > { %v1580_v29 = vpop.f32.mrf.mxu1 }
 0x4d6   : > { %v996_v30 = vpop.f32.mrf.mxu1 }
 0x4d7   : > { %1004 = vrot.lane.b32.xlu0 %v996_v30, %s1794_s21  ;;  %1001 = vrot.lane.b32.xlu1 %v996_v30, %s1795_s22  ;;  %s2283_s21 = smov 121   ;;  %s2284_s22 = smov 96  }
 0x4d8   : > { %v1615_v31 = vpop.f32.mrf.mxu1 }
 0x4da   : > { %v1105_v32 = vpop.f32.mrf.mxu1 }
 0x4db   : > { %1010 = vrot.lane.b32.xlu0 %v996_v30, %s1797_s30  ;;  %1007 = vrot.lane.b32.xlu1 %v996_v30, %s1796_s23  ;;  %s1454_s23 = sshll.u32 %s1781_s27, 7  ;;  %s1804_s27 = smov [#allocation5]  }
 0x4dc   : > { %v1620_v33 = vpop.f32.mrf.mxu1  ;;  %s2228_s15 = scalar_lea.hbm %s2276_s7, %s1454_s23 }
 0x4df   : > { %1016 = vrot.lane.b32.xlu0 %v996_v30, %s1799_s10  ;;  %1013 = vrot.lane.b32.xlu1 %v996_v30, %s1798_s8 }
 0x4e3   : > { %1019 = vrot.lane.b32.xlu1 %v996_v30, %s2282_s12  ;;  %s1380_s12 = sshll.u32 %s281_s17, 3 }
 0x4e4   : > { %s283_s30 = scalar_lea.vmem [#allocation5], %s1380_s12 }
 0x4e5   : > { %s1299_s8 = sshll.u32 %s283_s30, 4  ;;  %s1300_s8 = int_to_ptr.vmem [resolvable:$true] %s1299_s8 }
 0x4e6   : > { %s1713_s19 = scalar_lea.vmem %s1300_s8, 128 }
 0x4e7   : > { %p1714_p12 = scmp.ne.s32.totalorder %s1300_s8, %s1713_s19 }
 0x4e9   : > { %p1715_p13 = pnand %p1714_p12, %p1885_p4 }
 0x4eb   : > { %p1716_p0 = pneg %p1715_p13 }
 0x549   : > { %v1005_v34 = vpop.permute.xlu0 %1004  ;;  %v1002_v36 = vpop.permute.xlu1 %1001 }
 0x54a   : > { %v1022_v37 = vsel %vm657_vm3, %v996_v30, %v1002_v36 }
 0x54b   : > { %v1023_v39 = vsel %vm659_vm4, %v1022_v37, %v1005_v34 }
 0x54d   : > { %v1011_v38 = vpop.permute.xlu0 %1010  ;;  %v1008_v40 = vpop.permute.xlu1 %1007 }
 0x54e   : > { %v1024_v41 = vsel %vm661_vm5, %v1023_v39, %v1008_v40 }
 0x54f   : > { %v1025_v42 = vsel %vm663_vm6, %v1024_v41, %v1011_v38 }
 0x551   : > { %v1014_v43 = vpop.permute.xlu1 %1013  ;;  %v1017_v44 = vpop.permute.xlu0 %1016 }
 0x552   : > { %v1026_v45 = vsel %vm665_vm7, %v1025_v42, %v1014_v43 }
 0x553   : > { %v1027_v47 = vsel %vm667_vm8, %v1026_v45, %v1017_v44 }
 0x555   : > { %v1020_v46 = vpop.permute.xlu1 %1019 }
 0x556   : > { %v1028_v48 = vsel %vm669_vm9, %v1027_v47, %v1020_v46 }
 0x557   : > { %1030 = vrot.lane.b32.xlu0 %v1028_v48, %s2283_s21 }
 0x5c9   : > { %v1031_v49 = vpop.permute.xlu0 %1030 }
 0x5ca   : > { %v1106_v50 = vadd.f32 %v1105_v32, %v1031_v49 }
 0x5cc   : > { %v1109_v51 = vsel %vm751_vm10, %v1106_v50, -inf }
 0x5cd   : > { %1110 = vmax.xlane.f32.xlu1 %v1109_v51 }
 0x656   : > { %v1111_v52 = vpop.xlane.xlu1 %1110 }
 0x657   : > { %v1112_v53 = vsub.f32 %v1106_v50, %v1111_v52 }
 0x659   : > { %v1113_v54 = vmul.f32 1.442695, %v1112_v53 }
 0x65b   : > { %1709 = vpow2.f32 %v1113_v54 }
 0x668   : > { %v1710_v55 = vpop.eup %1709 }
 0x669   : > { %v1115_v56 = vsel %vm751_vm10, %v1710_v55, 0.0 }
 0x66a   : > { %1116 = vadd.xlane.f32.xlu0 %v1115_v56 }
 0x680   : > { %469 = vrot.lane.b32.xlu0 %v2054_v35, %s2284_s22  ;;  %v1201_v35 = vld [vmem:[%s2274_s5 + $0x18] sm:$0xff] }
 0x6f3   : > { %v1117_v57 = vpop.xlane.xlu0 %1116 }
 0x6f4   : > { %1711 = vrcp.f32 %v1117_v57 }
 0x6f7   : > { %v470_v58 = vpop.permute.xlu0 %469 }
 0x6f8   : > { %473 = vst.msk [vmem:[#allocation4 + $0x8] sm:$0xff] %vm371_vm2, %v470_v58 }
 0x6ff   : > { %v842_v59 = vld [vmem:[#allocation4 + $0x8] sm:$0xff] }
 0x700   : > { %1622 = vmatpush3.msra.mxu0 %v842_v59 }
 0x701   : > { %v1712_v60 = vpop.eup %1711  ;;  %1626 = vmatprep.subr.mxu0 %v1791_v1 }
 0x702   : > { %v1119_v61 = vmul.f32 %v1712_v60, %v1710_v55 }
 0x704   : > { %1624 = vmatmul.mubr.msk.f32.vlgmr.msra.gmra.mxu0 %vm751_vm10, %v1119_v61 }
 0x705   : > { %1634 = vmatprep.mubr.msk.f32.mxu0 %vm1792_vm0, %v1791_v1  ;;  %1627 = vmatpush3.msra.mxu0 %v1201_v35 }
 0x706   : > { %1628 = vmatprep.subr.mxu0 %v1791_v1 }
 0x707   : > { %1629 = vmatpush3.msra.mxu0 %v1200_v62 }
 0x708   : > { %1630 = vmatprep.subr.mxu0 %v1791_v1 }
 0x709   : > { %1631 = vmatpush3.msra.mxu0 %v1199_v63 }
 0x70a   : > { %1632 = vmatprep.subr.mxu0 %v1791_v1  ;;  %v1451_v1 = vld [vmem:[%s2275_s6] ss:$0 sm:$0xff] }
 0x70b   : > { %1633 = vmatpush3.msra.mxu0 %v1198_v0 }
 0x7c4   : > { %v1189_v2 = vpop.f32.mrf.mxu0 }
 0x7c5   : > { %1194 = vrot.lane.b32.xlu1 %v1189_v2, %s1803_s20  ;;  %s1717_s20 = sshll.u32 %s1804_s27, 4  ;;  %s1718_s20 = int_to_ptr.vmem [resolvable:$false] %s1717_s20 }
 0x7c6   : > { %v1625_v3 = vpop.f32.mrf.mxu0  ;;  %s1719_s12 = scalar_lea.vmem %s1718_s20, 256  ;;  %p1720_p1 = scmp.lt.s32.totalorder %s1300_s8, %s1718_s20 }
 0x7c7   : > { %p1721_p2 = scmp.lt.s32.totalorder %s1719_s12, %s1713_s19 }
 0x7c9   : > { %p1722_p3 = por %p1721_p2, %p1720_p1 }
 0x7cb   : > { %p1723_p5 = pnand %p1722_p3, %p1716_p0 }
 0x837   : > { %v1195_v4 = vpop.permute.xlu1 %1194 }
 0x838   : > { %v1197_v5 = vsel %vm371_vm2, %v2176_v28, %v1195_v4 }
 0x839   : > { %1635 = vmatmul.mubr.msk.f32.vlgmr.msra.gmra.mxu0 %vm297_vm1, %v1197_v5 }
 0x8f9   : > { %v1279_v6 = vpop.f32.mrf.mxu0 }
 0x8fa   : > { %v1280_v7 = vadd.f32 %v1451_v1, %v1279_v6 }
 0x8fb   : > { %v1636_v8 = vpop.f32.mrf.mxu0 }
 0x8fc   : > { %1283 = vst.msk [vmem:[%s283_s30] sm:$0xff] %vm297_vm1, %v1280_v7 }
 0x8fd   : > { %1726 = shalt.err (!%p1723_p5)
}
 0x8fe   : > { %s1727_s21 = scalar_lea.hbm %s2228_s15, 128  ;;  %s1731_s23 = scalar_lea.hbm %s2276_s7, 256 }
 0x8ff   : > { %p1728_p6 = scmp.ne.s32.totalorder %s2228_s15, %s1727_s21  ;;  %p1732_p10 = scmp.lt.s32.totalorder %s2228_s15, %s2276_s7 }
 0x900   : > { %p1733_p11 = scmp.lt.s32.totalorder %s1731_s23, %s1727_s21 }
 0x901   : > { %p1729_p7 = pnand %p1728_p6, %p1885_p4 }
 0x902   : > { %p1734_p12 = por %p1733_p11, %p1732_p10 }
 0x903   : > { %p1730_p9 = pneg %p1729_p7 }
 0x905   : > { %p1735_p13 = pnand %p1734_p12, %p1730_p9 }
 0x907   : > { %1738 = shalt.err (!%p1735_p13)
}
 0x908   : > { %1637 = dma.vmem_to_hbm [thread:$0]  (%p1885_p4), %s1300_s8, 128, %s2228_s15, %s1285_s18  }
 0x909 PF: > { %p1643_p0 = scmp.ge.s32.totalorder %s1789_s29, 2  ;;  %s1311_s16 = sand.u32 1, %s1769_s24  }
 0x90a   : > { %s1312_s19 = scalar_lea.sflag [#allocation6], %s1311_s16 }
 0x90b   : > { %p1640_p1 = pnand %p1643_p0, %p1892_p8 }
 0x90d   : > { %p1641_p2 = pneg %p1640_p1 }
 0x90f   : > { %1764 = dma.done.wait (%p1641_p2), %s1312_s19, 128  }
 0x910   : > { %1766 = vsyncadd (%p1641_p2), %s1312_s19, 4294967168  ;;  %s20_s29 = sadd.s32 1, %s1789_s29   ;;  %s2285_s24 = smov %s1773_s25 }
 0x911   : > { %p17_p3 = scmp.ge.s32.totalorder %s20_s29, 4   ;;  %s2286_s25 = smov %s1777_s26 }
 0x912   : > { %s2287_s26 = smov %s1898_s14  ;;  %s2288_s27 = smov %s1785_s28 }
 0x913   : > { %s2289_s28 = smov %s2291_s9  ;;  %19 = sbr.rel (!%p17_p3) target bundleno = 4 (0x4), region = 99 }
 0x918   :  { %1317 = vsyncpa [#allocation6], 1 }
 0x919   :  { %1319 = vsyncpa [#allocation6 + $0x1], 1 }

// kernel: tpu_custom_call.1
= control target key start
LH: loop header
LB: loop body
LE: loop exit
PB: predicated region body
PF: predicated region fallthrough
CT: control target
= control target key end

     0   :  { %12 = vsyncpa [#allocation6], 0  ;;  %s2269_s0 = inlined_call_operand.vmem [shape: f32[2,8,32], index: 0, kind: input, shape index: {}]   ;;  %s2270_s1 = inlined_call_operand.vmem [shape: f32[2,32,48], index: 1, kind: input, shape index: {}]   ;;  %s2271_s2 = inlined_call_operand.vmem [shape: f32[2,128,16], index: 2, kind: input, shape index: {}]   ;;  %s2272_s3 = inlined_call_operand.vmem [shape: f32[2,1,16], index: 3, kind: input, shape index: {}]   ;;  %s2273_s4 = inlined_call_operand.vmem [shape: f32[2,1,16], index: 4, kind: input, shape index: {}]   ;;  %s2274_s5 = inlined_call_operand.vmem [shape: f32[32,32], index: 5, kind: input, shape index: {}]   ;;  %s2275_s6 = inlined_call_operand.vmem [shape: f32[1,32], index: 6, kind: input, shape index: {}]   ;;  %s2276_s7 = inlined_call_operand.hbm [shape: f32[2,8,32], index: 7, kind: output, shape index: {}]  }
   0x1   :  { %14 = vsyncpa [#allocation6 + $0x1], 0  ;;  %s1845_s24 = smov 0   ;;  %s1847_s25 = smov 0  }
   0x2   :  { %s1849_s26 = smov 0   ;;  %s1851_s27 = smov 0  }
   0x3   :  { %s1853_s28 = smov 0   ;;  %s1855_s29 = smov 0  }
   0x4 LB: > { %s1375_s30 = sadd.s32 4294967295, %s1789_s29   ;;  %s1376_s8 = sadd.s32 4294967294, %s1789_s29   ;;  %s1789_s29 = sphi %s1855_s29, %s20_s29   ;;  %s1785_s28 = sphi %s1853_s28, %s2289_s28   ;;  %s1781_s27 = sphi %s1851_s27, %s2288_s27   ;;  %s1777_s26 = sphi %s1849_s26, %s2287_s26   ;;  %s1773_s25 = sphi %s1847_s25, %s2286_s25   ;;  %s1769_s24 = sphi %s1845_s24, %s2285_s24  }
   0x5   : > { %s32_s9 = sadd.s32 1, %s1785_s28  ;;  %s193_s10 = sadd.s32 1, %s1777_s26 }
   0x6   : > { %p34_p0 = scmp.ge.s32.totalorder %s32_s9, 2  ;;  %p203_p1 = scmp.ne.s32.totalorder %s1777_s26, %s1773_s25 }
   0x7   : > { %p204_p2 = scmp.eq.s32.totalorder %s1375_s30, 1  ;;  %p209_p3 = scmp.ne.s32.totalorder %s1773_s25, %s1769_s24 }
   0x8   : > { %s2291_s9 = smov (%p34_p0, %s32_s9), 0  ;;  %p210_p5 = scmp.eq.s32.totalorder %s1376_s8, 1 }
   0x9   : > { %p1885_p4 = por %p204_p2, %p203_p1  ;;  %s188_s12 = ssub.s32 %s1785_s28, %s2291_s9 }
   0xa   : > { %p1379_p6 = scmp.ge.s32.totalorder %s1789_s29, 1  ;;  %p191_p7 = scmp.eq.s32.totalorder %s188_s12, 0 }
   0xb   : > { %p1892_p8 = por %p210_p5, %p209_p3  ;;  %p253_p9 = scmp.lt.s32.totalorder %s1789_s29, 3 }
   0xc   : > { %s1898_s14 = scalar_select %p191_p7, %s1777_s26, %s193_s10  }
   0xd   : > { %p254_p10 = pnand %p1379_p6, %p253_p9 }
   0xe   : > { %p284_p11 = scmp.lt.s32.totalorder (!%p254_p10), %s1781_s27, 1  ;;  %s1793_s16 = smov (!%p254_p10), 112  }
   0xf   : > { %257 = sbr.rel (%p254_p10) target bundleno = 2313 (0x909), region = 48  ;;  %s1794_s21 = smov (!%p254_p10), 2  }
  0x10   : > { %s1796_s23 = smov (!%p254_p10), 3   ;;  %s1797_s30 = smov (!%p254_p10), 4  }
  0x11   : > { %s1798_s8 = smov (!%p254_p10), 5   ;;  %s1799_s10 = smov (!%p254_p10), 6  }
  0x12   : > { %s2278_s15 = smov (!%p254_p10), 121   ;;  %s2277_s17 = smov (!%p254_p10), 96  }
  0x13   : > { %s1803_s20 = smov (!%p254_p10), 16  }
  0x14   : > { %v296_v0 = vld [vmem:[%s2270_s1 + $0x18] sm:$0xff]  ;;  %v1791_v1 = vmov 0.0   ;;  %v295_v2 = vld [vmem:[%s2270_s1 + $0x10] sm:$0xff]  ;;  %vm1792_vm0 = vmmov 0   ;;  %s285_s19 = scalar_select %p284_p11, %s1781_s27, 1  ;;  %v294_v3 = vld [vmem:[%s2270_s1 + $0x8] sm:$0xff] }
  0x15   : > { %1514 = vmatprep.subr.mxu0 %v1791_v1  ;;  %1522 = vmatprep.mubr.msk.f32.mxu0 %vm1792_vm0, %v1791_v1  ;;  %v293_v4 = vld [vmem:[%s2270_s1] sm:$0xff]  ;;  %vm297_vm1 = vcmask 261120   ;;  %vm371_vm2 = vcmask 130048   ;;  %v504_v6 = vld [vmem:[%s2271_s2 + $0x78] sm:$0xff]  ;;  %v503_v7 = vld [vmem:[%s2271_s2 + $0x70] sm:$0xff]  ;;  %vm657_vm3 = vcmask 1040384  }
  0x16   : > { %1515 = vmatpush3.msra.mxu0 %v296_v0  ;;  %1525 = vmatprep.subr.mxu1 %v1791_v1  ;;  %s1381_s22 = sshll.u32 %s285_s19, 3  ;;  %v502_v8 = vld [vmem:[%s2271_s2 + $0x68] sm:$0xff]  ;;  %v501_v9 = vld [vmem:[%s2271_s2 + $0x60] sm:$0xff]  ;;  %v500_v10 = vld [vmem:[%s2271_s2 + $0x58] sm:$0xff]  ;;  %vm659_vm4 = vcmask 1041408   ;;  %vm661_vm5 = vcmask 1042432  }
  0x17   : > { %1516 = vmatprep.subr.mxu0 %v1791_v1  ;;  %1533 = vmatprep.mubr.msk.f32.mxu1 %vm1792_vm0, %v1791_v1  ;;  %s287_s12 = scalar_lea.vmem %s2269_s0, %s1381_s22  ;;  %v499_v11 = vld [vmem:[%s2271_s2 + $0x50] sm:$0xff]  ;;  %v498_v12 = vld [vmem:[%s2271_s2 + $0x48] sm:$0xff]  ;;  %v497_v13 = vld [vmem:[%s2271_s2 + $0x40] sm:$0xff]  ;;  %s1795_s22 = smov 1   ;;  %vm663_vm6 = vcmask 1043456   ;;  %vm665_vm7 = vcmask 1044480  }
  0x18   : > { %1517 = vmatpush3.msra.mxu0 %v295_v2  ;;  %v1925_v5 = vld [vmem:[%s287_s12] sm:$0xff]  ;;  %v496_v14 = vld [vmem:[%s2271_s2 + $0x38] sm:$0xff]  ;;  %v495_v15 = vld [vmem:[%s2271_s2 + $0x30] sm:$0xff]  ;;  %s2279_s12 = smov 7   ;;  %vm667_vm8 = vcmask 1045504   ;;  %vm669_vm9 = vcmask 1046528  }
  0x19   : > { %1518 = vmatprep.subr.mxu0 %v1791_v1  ;;  %v494_v16 = vld [vmem:[%s2271_s2 + $0x28] sm:$0xff]  ;;  %v493_v17 = vld [vmem:[%s2271_s2 + $0x20] sm:$0xff]  ;;  %v492_v18 = vld [vmem:[%s2271_s2 + $0x18] sm:$0xff]  ;;  %vm751_vm10 = vcmask 64512  }
  0x1a   : > { %1519 = vmatpush3.msra.mxu0 %v294_v3  ;;  %v491_v19 = vld [vmem:[%s2271_s2 + $0x10] sm:$0xff]  ;;  %v490_v20 = vld [vmem:[%s2271_s2 + $0x8] sm:$0xff]  ;;  %v489_v21 = vld [vmem:[%s2271_s2] sm:$0xff] }
  0x1b   : > { %1520 = vmatprep.subr.mxu0 %v1791_v1  ;;  %v1386_v22 = vld [vmem:[%s2270_s1 + $0x38] sm:$0xff]  ;;  %v1385_v23 = vld [vmem:[%s2270_s1 + $0x30] sm:$0xff]  ;;  %v1384_v24 = vld [vmem:[%s2270_s1 + $0x28] sm:$0xff] }
  0x1c   : > { %1521 = vmatpush3.msra.mxu0 %v293_v4  ;;  %1526 = vmatpush3.msra.mxu1 %v1386_v22  ;;  %v1383_v25 = vld [vmem:[%s2270_s1 + $0x20] sm:$0xff] }
  0x1d   : > { %1523 = vmatmul.mubr.msk.f32.vlgmr.msra.gmra.mxu0 %vm297_vm1, %v1925_v5  ;;  %1536 = vmatprep.subr.mxu0 %v1791_v1  ;;  %v1389_v28 = vld [vmem:[%s2273_s4] ss:$0 sm:$0xff] }
  0x1e   : > { %1537 = vmatpush3.xpose.msk.msra.mxu0 %vm371_vm2, %v504_v6  ;;  %1568 = vmatprep.mubr.msk.f32.mxu0 %vm1792_vm0, %v1791_v1  ;;  %v1388_v32 = vld [vmem:[%s2272_s3] ss:$0 sm:$0xff]  ;;  %v1428_v6 = vld [vmem:[%s2271_s2 + $0xf8] sm:$0xff] }
  0x1f   : > { %1538 = vmatprep.subr.mxu0 %v1791_v1  ;;  %1527 = vmatprep.subr.mxu1 %v1791_v1 }
  0x20   : > { %1528 = vmatpush3.msra.mxu1 %v1385_v23  ;;  %v1430_v23 = vld [vmem:[%s2273_s4 + $0x1] ss:$0 sm:$0xff] }
  0x21   : > { %1529 = vmatprep.subr.mxu1 %v1791_v1 }
  0x22   : > { %1539 = vmatpush3.xpose.msk.msra.mxu0 %vm371_vm2, %v503_v7  ;;  %1530 = vmatpush3.msra.mxu1 %v1384_v24  ;;  %v1427_v7 = vld [vmem:[%s2271_s2 + $0xf0] sm:$0xff] }
  0x23   : > { %1540 = vmatprep.subr.mxu0 %v1791_v1  ;;  %1531 = vmatprep.subr.mxu1 %v1791_v1 }
  0x24   : > { %1532 = vmatpush3.msra.mxu1 %v1383_v25  ;;  %v1412_v25 = vld [vmem:[%s2272_s3 + $0x1] ss:$0 sm:$0xff] }
  0x25   : > { %1534 = vmatmul.mubr.msk.f32.vlgmr.msra.gmra.mxu1 %vm297_vm1, %v1925_v5  ;;  %1571 = vmatprep.subr.mxu1 %v1791_v1 }
  0x26   : > { %1541 = vmatpush3.xpose.msk.msra.mxu0 %vm371_vm2, %v502_v8  ;;  %1573 = vmatprep.mubr.msk.f32.mxu1 %vm1792_vm0, %v1791_v1  ;;  %v1426_v8 = vld [vmem:[%s2271_s2 + $0xe8] sm:$0xff] }
  0x27   : > { %1542 = vmatprep.subr.mxu0 %v1791_v1 }
  0x2a   : > { %1543 = vmatpush3.xpose.msk.msra.mxu0 %vm371_vm2, %v501_v9  ;;  %v1425_v9 = vld [vmem:[%s2271_s2 + $0xe0] sm:$0xff] }
  0x2b   : > { %1544 = vmatprep.subr.mxu0 %v1791_v1 }
  0x2e   : > { %1545 = vmatpush3.xpose.msk.msra.mxu0 %vm371_vm2, %v500_v10  ;;  %v1424_v10 = vld [vmem:[%s2271_s2 + $0xd8] sm:$0xff] }
  0x2f   : > { %1546 = vmatprep.subr.mxu0 %v1791_v1 }
  0x32   : > { %1547 = vmatpush3.xpose.msk.msra.mxu0 %vm371_vm2, %v499_v11  ;;  %v1423_v11 = vld [vmem:[%s2271_s2 + $0xd0] sm:$0xff] }
  0x33   : > { %1548 = vmatprep.subr.mxu0 %v1791_v1 }
  0x36   : > { %1549 = vmatpush3.xpose.msk.msra.mxu0 %vm371_vm2, %v498_v12  ;;  %v1422_v12 = vld [vmem:[%s2271_s2 + $0xc8] sm:$0xff] }
  0x37   : > { %1550 = vmatprep.subr.mxu0 %v1791_v1 }
  0x3a   : > { %1551 = vmatpush3.xpose.msk.msra.mxu0 %vm371_vm2, %v497_v13  ;;  %v1421_v13 = vld [vmem:[%s2271_s2 + $0xc0] sm:$0xff] }
  0x3b   : > { %1552 = vmatprep.subr.mxu0 %v1791_v1 }
  0x3e   : > { %1553 = vmatpush3.xpose.msk.msra.mxu0 %vm371_vm2, %v496_v14  ;;  %v1420_v14 = vld [vmem:[%s2271_s2 + $0xb8] sm:$0xff] }
  0x3f   : > { %1554 = vmatprep.subr.mxu0 %v1791_v1 }
  0x42   : > { %1555 = vmatpush3.xpose.msk.msra.mxu0 %vm371_vm2, %v495_v15  ;;  %v1419_v15 = vld [vmem:[%s2271_s2 + $0xb0] sm:$0xff] }
  0x43   : > { %1556 = vmatprep.subr.mxu0 %v1791_v1 }
  0x46   : > { %1557 = vmatpush3.xpose.msk.msra.mxu0 %vm371_vm2, %v494_v16  ;;  %v1418_v16 = vld [vmem:[%s2271_s2 + $0xa8] sm:$0xff] }
  0x47   : > { %1558 = vmatprep.subr.mxu0 %v1791_v1 }
  0x4a   : > { %1559 = vmatpush3.xpose.msk.msra.mxu0 %vm371_vm2, %v493_v17  ;;  %v1417_v17 = vld [vmem:[%s2271_s2 + $0xa0] sm:$0xff] }
  0x4b   : > { %1560 = vmatprep.subr.mxu0 %v1791_v1 }
  0x4e   : > { %1561 = vmatpush3.xpose.msk.msra.mxu0 %vm371_vm2, %v492_v18  ;;  %v1416_v18 = vld [vmem:[%s2271_s2 + $0x98] sm:$0xff] }
  0x4f   : > { %1562 = vmatprep.subr.mxu0 %v1791_v1 }
  0x52   : > { %1563 = vmatpush3.xpose.msk.msra.mxu0 %vm371_vm2, %v491_v19  ;;  %v1415_v19 = vld [vmem:[%s2271_s2 + $0x90] sm:$0xff] }
  0x53   : > { %1564 = vmatprep.subr.mxu0 %v1791_v1 }
  0x56   : > { %1565 = vmatpush3.xpose.msk.msra.mxu0 %vm371_vm2, %v490_v20  ;;  %v1414_v20 = vld [vmem:[%s2271_s2 + $0x88] sm:$0xff] }
  0x57   : > { %1566 = vmatprep.subr.mxu0 %v1791_v1 }
  0x5a   : > { %1567 = vmatpush3.xpose.msk.msra.mxu0 %vm371_vm2, %v489_v21  ;;  %v1413_v21 = vld [vmem:[%s2271_s2 + $0x80] sm:$0xff] }
  0x5b   : > { %1621 = vmatprep.subr.mxu0 %v1791_v1 }
  0xdd   : > { %v2033_v26 = vpop.f32.mrf.mxu0 }
  0xde   : > { %372 = vst.msk [vmem:[#allocation2] sm:$0xff] %vm371_vm2, %v2033_v26  ;;  %374 = vrot.lane.b32.xlu0 %v2033_v26, %s1793_s16 }
  0xdf   : > { %v1524_v27 = vpop.f32.mrf.mxu0 }
  0xe5   : > { %v477_v29 = vld [vmem:[#allocation2] sm:$0xff]  ;;  %v2054_v35 = vpop.f32.mrf.mxu1 }
  0xe6   : > { %v512_v30 = vadd.f32 %v1389_v28, %v477_v29  ;;  %v487_v34 = vadd.f32 %v1388_v32, %v477_v29  ;;  %462 = vst.msk [vmem:[#allocation2 + $0x8] sm:$0xff] %vm371_vm2, %v2054_v35 }
  0xe7   : > { %v1535_v36 = vpop.f32.mrf.mxu1 }
  0xe8   : > { %1569 = vmatmul.mubr.msk.f32.vlgmr.msra.gmra.mxu0 %vm371_vm2, %v512_v30 }
  0xe9   : > { %1623 = vmatprep.mubr.msk.f32.mxu0 %vm1792_vm0, %v1791_v1 }
  0xed   : > { %v1410_v22 = vld [vmem:[#allocation2 + $0x8] sm:$0xff] }
  0xee   : > { %v878_v24 = vadd.f32 %v1430_v23, %v1410_v22  ;;  %v851_v27 = vadd.f32 %v1412_v25, %v1410_v22 }
 0x150   : > { %v375_v31 = vpop.permute.xlu0 %374 }
 0x151   : > { %377 = vst.msk [vmem:[#allocation3] sm:$0xff] %vm371_vm2, %v375_v31 }
 0x158   : > { %v478_v33 = vld [vmem:[#allocation3] sm:$0xff] }
 0x159   : > { %1572 = vmatpush3.xpose.msk.msra.mxu1 %vm371_vm2, %v478_v33 }
 0x15a   : > { %1576 = vmatprep.subr.mxu1 %v1791_v1 }
 0x15c   : > { %1574 = vmatmul.mubr.msk.f32.vlgmr.msra.gmra.mxu1 %vm371_vm2, %v487_v34 }
 0x15d   : > { %1578 = vmatprep.mubr.msk.f32.mxu1 %vm1792_vm0, %v1791_v1 }
 0x1a8   : > { %v631_v37 = vpop.f32.mrf.mxu0 }
 0x1a9   : > { %639 = vrot.lane.b32.xlu1 %v631_v37, %s1794_s21  ;;  %636 = vrot.lane.b32.xlu0 %v631_v37, %s1795_s22 }
 0x1aa   : > { %v1570_v38 = vpop.f32.mrf.mxu0 }
 0x1ad   : > { %642 = vrot.lane.b32.xlu1 %v631_v37, %s1796_s23  ;;  %645 = vrot.lane.b32.xlu0 %v631_v37, %s1797_s30 }
 0x1b1   : > { %648 = vrot.lane.b32.xlu1 %v631_v37, %s1798_s8  ;;  %651 = vrot.lane.b32.xlu0 %v631_v37, %s1799_s10 }
 0x1b5   : > { %654 = vrot.lane.b32.xlu1 %v631_v37, %s2279_s12  ;;  %s2282_s12 = smov 7  }
 0x21b   : > { %v640_v39 = vpop.permute.xlu1 %639  ;;  %v637_v40 = vpop.permute.xlu0 %636 }
 0x21c   : > { %v658_v41 = vsel %vm657_vm3, %v631_v37, %v637_v40  ;;  %v747_v42 = vpop.f32.mrf.mxu1 }
 0x21d   : > { %v660_v45 = vsel %vm659_vm4, %v658_v41, %v640_v39 }
 0x21e   : > { %v1575_v43 = vpop.f32.mrf.mxu1 }
 0x21f   : > { %v643_v44 = vpop.permute.xlu1 %642  ;;  %v646_v46 = vpop.permute.xlu0 %645 }
 0x220   : > { %v662_v47 = vsel %vm661_vm5, %v660_v45, %v643_v44 }
 0x221   : > { %v664_v48 = vsel %vm663_vm6, %v662_v47, %v646_v46 }
 0x223   : > { %v649_v49 = vpop.permute.xlu1 %648  ;;  %v652_v51 = vpop.permute.xlu0 %651 }
 0x224   : > { %v666_v50 = vsel %vm665_vm7, %v664_v48, %v649_v49 }
 0x225   : > { %v668_v52 = vsel %vm667_vm8, %v666_v50, %v652_v51 }
 0x227   : > { %v655_v53 = vpop.permute.xlu1 %654 }
 0x228   : > { %v670_v54 = vsel %vm669_vm9, %v668_v52, %v655_v53 }
 0x229   : > { %672 = vrot.lane.b32.xlu0 %v670_v54, %s2278_s15 }
 0x29b   : > { %v673_v55 = vpop.permute.xlu0 %672 }
 0x29c   : > { %v748_v56 = vadd.f32 %v747_v42, %v673_v55 }
 0x29e   : > { %v752_v57 = vsel %vm751_vm10, %v748_v56, -inf }
 0x29f   : > { %753 = vmax.xlane.f32.xlu1 %v752_v57 }
 0x2b0   : > { %464 = vrot.lane.b32.xlu1 %v2054_v35, %s1793_s16 }
 0x328   : > { %v754_v58 = vpop.xlane.xlu1 %753 }
 0x329   : > { %v755_v59 = vsub.f32 %v748_v56, %v754_v58 }
 0x32b   : > { %v756_v60 = vmul.f32 1.442695, %v755_v59 }
 0x32c   : > { %v465_v61 = vpop.permute.xlu1 %464 }
 0x32d   : > { %1705 = vpow2.f32 %v756_v60  ;;  %468 = vst.msk [vmem:[#allocation3 + $0x8] sm:$0xff] %vm371_vm2, %v465_v61 }
 0x33a   : > { %v1706_v62 = vpop.eup %1705 }
 0x33b   : > { %v758_v63 = vsel %vm751_vm10, %v1706_v62, 0.0 }
 0x33c   : > { %759 = vadd.xlane.f32.xlu0 %v758_v63  ;;  %v1199_v63 = vld [vmem:[%s2274_s5 + $0x8] sm:$0xff] }
 0x352   : > { %378 = vrot.lane.b32.xlu0 %v2033_v26, %s2277_s17  ;;  %v840_v26 = vld [vmem:[#allocation3 + $0x8] sm:$0xff]  ;;  %s281_s17 = sand.u32 1, %s1773_s25  }
 0x353   : > { %s1285_s18 = scalar_lea.sflag [#allocation6], %s281_s17 }
 0x3c5   : > { %v760_v0 = vpop.xlane.xlu0 %759 }
 0x3c6   : > { %1707 = vrcp.f32 %v760_v0  ;;  %v1198_v0 = vld [vmem:[%s2274_s5] sm:$0xff] }
 0x3c9   : > { %v379_v2 = vpop.permute.xlu0 %378 }
 0x3ca   : > { %381 = vst.msk [vmem:[#allocation4] sm:$0xff] %vm371_vm2, %v379_v2 }
 0x3d1   : > { %v479_v3 = vld [vmem:[#allocation4] sm:$0xff] }
 0x3d2   : > { %1577 = vmatpush3.msra.mxu1 %v479_v3 }
 0x3d3   : > { %v1708_v4 = vpop.eup %1707  ;;  %1581 = vmatprep.subr.mxu1 %v1791_v1 }
 0x3d4   : > { %v762_v5 = vmul.f32 %v1708_v4, %v1706_v62  ;;  %v1200_v62 = vld [vmem:[%s2274_s5 + $0x10] sm:$0xff] }
 0x3d6   : > { %1579 = vmatmul.mubr.msk.f32.vlgmr.msra.gmra.mxu1 %vm751_vm10, %v762_v5 }
 0x3d7   : > { %1582 = vmatpush3.xpose.msk.msra.mxu1 %vm371_vm2, %v1428_v6  ;;  %1613 = vmatprep.mubr.msk.f32.mxu1 %vm1792_vm0, %v1791_v1 }
 0x3d8   : > { %1583 = vmatprep.subr.mxu1 %v1791_v1 }
 0x3db   : > { %1584 = vmatpush3.xpose.msk.msra.mxu1 %vm371_vm2, %v1427_v7 }
 0x3dc   : > { %1585 = vmatprep.subr.mxu1 %v1791_v1 }
 0x3df   : > { %1586 = vmatpush3.xpose.msk.msra.mxu1 %vm371_vm2, %v1426_v8 }
 0x3e0   : > { %1587 = vmatprep.subr.mxu1 %v1791_v1 }
 0x3e3   : > { %1588 = vmatpush3.xpose.msk.msra.mxu1 %vm371_vm2, %v1425_v9 }
 0x3e4   : > { %1589 = vmatprep.subr.mxu1 %v1791_v1 }
 0x3e7   : > { %1590 = vmatpush3.xpose.msk.msra.mxu1 %vm371_vm2, %v1424_v10 }
 0x3e8   : > { %1591 = vmatprep.subr.mxu1 %v1791_v1 }
 0x3eb   : > { %1592 = vmatpush3.xpose.msk.msra.mxu1 %vm371_vm2, %v1423_v11 }
 0x3ec   : > { %1593 = vmatprep.subr.mxu1 %v1791_v1 }
 0x3ef   : > { %1594 = vmatpush3.xpose.msk.msra.mxu1 %vm371_vm2, %v1422_v12 }
 0x3f0   : > { %1595 = vmatprep.subr.mxu1 %v1791_v1 }
 0x3f3   : > { %1596 = vmatpush3.xpose.msk.msra.mxu1 %vm371_vm2, %v1421_v13 }
 0x3f4   : > { %1597 = vmatprep.subr.mxu1 %v1791_v1 }
 0x3f7   : > { %1598 = vmatpush3.xpose.msk.msra.mxu1 %vm371_vm2, %v1420_v14 }
 0x3f8   : > { %1599 = vmatprep.subr.mxu1 %v1791_v1 }
 0x3fb   : > { %1600 = vmatpush3.xpose.msk.msra.mxu1 %vm371_vm2, %v1419_v15 }
 0x3fc   : > { %1601 = vmatprep.subr.mxu1 %v1791_v1 }
 0x3ff   : > { %1602 = vmatpush3.xpose.msk.msra.mxu1 %vm371_vm2, %v1418_v16 }
 0x400   : > { %1603 = vmatprep.subr.mxu1 %v1791_v1 }
 0x403   : > { %1604 = vmatpush3.xpose.msk.msra.mxu1 %vm371_vm2, %v1417_v17 }
 0x404   : > { %1605 = vmatprep.subr.mxu1 %v1791_v1 }
 0x407   : > { %1606 = vmatpush3.xpose.msk.msra.mxu1 %vm371_vm2, %v1416_v18 }
 0x408   : > { %1607 = vmatprep.subr.mxu1 %v1791_v1 }
 0x40b   : > { %1608 = vmatpush3.xpose.msk.msra.mxu1 %vm371_vm2, %v1415_v19 }
 0x40c   : > { %1609 = vmatprep.subr.mxu1 %v1791_v1 }
 0x40f   : > { %1610 = vmatpush3.xpose.msk.msra.mxu1 %vm371_vm2, %v1414_v20 }
 0x410   : > { %1611 = vmatprep.subr.mxu1 %v1791_v1 }
 0x413   : > { %1612 = vmatpush3.xpose.msk.msra.mxu1 %vm371_vm2, %v1413_v21 }
 0x414   : > { %1616 = vmatprep.subr.mxu1 %v1791_v1 }
 0x416   : > { %1614 = vmatmul.mubr.msk.f32.vlgmr.msra.gmra.mxu1 %vm371_vm2, %v878_v24 }
 0x417   : > { %1617 = vmatpush3.xpose.msk.msra.mxu1 %vm371_vm2, %v840_v26  ;;  %1618 = vmatprep.mubr.msk.f32.mxu1 %vm1792_vm0, %v1791_v1 }
 0x41a   : > { %1619 = vmatmul.mubr.msk.f32.vlgmr.msra.gmra.mxu1 %vm371_vm2, %v851_v27 }
 0x496   : > { %v2176_v28 = vpop.f32.mrf.mxu1 }
 0x498   : > { %v1580_v29 = vpop.f32.mrf.mxu1 }
 0x4d6   : > { %v996_v30 = vpop.f32.mrf.mxu1 }
 0x4d7   : > { %1004 = vrot.lane.b32.xlu0 %v996_v30, %s1794_s21  ;;  %1001 = vrot.lane.b32.xlu1 %v996_v30, %s1795_s22  ;;  %s2283_s21 = smov 121   ;;  %s2284_s22 = smov 96  }
 0x4d8   : > { %v1615_v31 = vpop.f32.mrf.mxu1 }
 0x4da   : > { %v1105_v32 = vpop.f32.mrf.mxu1 }
 0x4db   : > { %1010 = vrot.lane.b32.xlu0 %v996_v30, %s1797_s30  ;;  %1007 = vrot.lane.b32.xlu1 %v996_v30, %s1796_s23  ;;  %s1454_s23 = sshll.u32 %s1781_s27, 7  ;;  %s1804_s27 = smov [#allocation5]  }
 0x4dc   : > { %v1620_v33 = vpop.f32.mrf.mxu1  ;;  %s2228_s15 = scalar_lea.hbm %s2276_s7, %s1454_s23 }
 0x4df   : > { %1016 = vrot.lane.b32.xlu0 %v996_v30, %s1799_s10  ;;  %1013 = vrot.lane.b32.xlu1 %v996_v30, %s1798_s8 }
 0x4e3   : > { %1019 = vrot.lane.b32.xlu1 %v996_v30, %s2282_s12  ;;  %s1380_s12 = sshll.u32 %s281_s17, 3 }
 0x4e4   : > { %s283_s30 = scalar_lea.vmem [#allocation5], %s1380_s12 }
 0x4e5   : > { %s1299_s8 = sshll.u32 %s283_s30, 4  ;;  %s1300_s8 = int_to_ptr.vmem [resolvable:$true] %s1299_s8 }
 0x4e6   : > { %s1713_s19 = scalar_lea.vmem %s1300_s8, 128 }
 0x4e7   : > { %p1714_p12 = scmp.ne.s32.totalorder %s1300_s8, %s1713_s19 }
 0x4e9   : > { %p1715_p13 = pnand %p1714_p12, %p1885_p4 }
 0x4eb   : > { %p1716_p0 = pneg %p1715_p13 }
 0x549   : > { %v1005_v34 = vpop.permute.xlu0 %1004  ;;  %v1002_v36 = vpop.permute.xlu1 %1001 }
 0x54a   : > { %v1022_v37 = vsel %vm657_vm3, %v996_v30, %v1002_v36 }
 0x54b   : > { %v1023_v39 = vsel %vm659_vm4, %v1022_v37, %v1005_v34 }
 0x54d   : > { %v1011_v38 = vpop.permute.xlu0 %1010  ;;  %v1008_v40 = vpop.permute.xlu1 %1007 }
 0x54e   : > { %v1024_v41 = vsel %vm661_vm5, %v1023_v39, %v1008_v40 }
 0x54f   : > { %v1025_v42 = vsel %vm663_vm6, %v1024_v41, %v1011_v38 }
 0x551   : > { %v1014_v43 = vpop.permute.xlu1 %1013  ;;  %v1017_v44 = vpop.permute.xlu0 %1016 }
 0x552   : > { %v1026_v45 = vsel %vm665_vm7, %v1025_v42, %v1014_v43 }
 0x553   : > { %v1027_v47 = vsel %vm667_vm8, %v1026_v45, %v1017_v44 }
 0x555   : > { %v1020_v46 = vpop.permute.xlu1 %1019 }
 0x556   : > { %v1028_v48 = vsel %vm669_vm9, %v1027_v47, %v1020_v46 }
 0x557   : > { %1030 = vrot.lane.b32.xlu0 %v1028_v48, %s2283_s21 }
 0x5c9   : > { %v1031_v49 = vpop.permute.xlu0 %1030 }
 0x5ca   : > { %v1106_v50 = vadd.f32 %v1105_v32, %v1031_v49 }
 0x5cc   : > { %v1109_v51 = vsel %vm751_vm10, %v1106_v50, -inf }
 0x5cd   : > { %1110 = vmax.xlane.f32.xlu1 %v1109_v51 }
 0x656   : > { %v1111_v52 = vpop.xlane.xlu1 %1110 }
 0x657   : > { %v1112_v53 = vsub.f32 %v1106_v50, %v1111_v52 }
 0x659   : > { %v1113_v54 = vmul.f32 1.442695, %v1112_v53 }
 0x65b   : > { %1709 = vpow2.f32 %v1113_v54 }
 0x668   : > { %v1710_v55 = vpop.eup %1709 }
 0x669   : > { %v1115_v56 = vsel %vm751_vm10, %v1710_v55, 0.0 }
 0x66a   : > { %1116 = vadd.xlane.f32.xlu0 %v1115_v56 }
 0x680   : > { %469 = vrot.lane.b32.xlu0 %v2054_v35, %s2284_s22  ;;  %v1201_v35 = vld [vmem:[%s2274_s5 + $0x18] sm:$0xff] }
 0x6f3   : > { %v1117_v57 = vpop.xlane.xlu0 %1116 }
 0x6f4   : > { %1711 = vrcp.f32 %v1117_v57 }
 0x6f7   : > { %v470_v58 = vpop.permute.xlu0 %469 }
 0x6f8   : > { %473 = vst.msk [vmem:[#allocation4 + $0x8] sm:$0xff] %vm371_vm2, %v470_v58 }
 0x6ff   : > { %v842_v59 = vld [vmem:[#allocation4 + $0x8] sm:$0xff] }
 0x700   : > { %1622 = vmatpush3.msra.mxu0 %v842_v59 }
 0x701   : > { %v1712_v60 = vpop.eup %1711  ;;  %1626 = vmatprep.subr.mxu0 %v1791_v1 }
 0x702   : > { %v1119_v61 = vmul.f32 %v1712_v60, %v1710_v55 }
 0x704   : > { %1624 = vmatmul.mubr.msk.f32.vlgmr.msra.gmra.mxu0 %vm751_vm10, %v1119_v61 }
 0x705   : > { %1634 = vmatprep.mubr.msk.f32.mxu0 %vm1792_vm0, %v1791_v1  ;;  %1627 = vmatpush3.msra.mxu0 %v1201_v35 }
 0x706   : > { %1628 = vmatprep.subr.mxu0 %v1791_v1 }
 0x707   : > { %1629 = vmatpush3.msra.mxu0 %v1200_v62 }
 0x708   : > { %1630 = vmatprep.subr.mxu0 %v1791_v1 }
 0x709   : > { %1631 = vmatpush3.msra.mxu0 %v1199_v63 }
 0x70a   : > { %1632 = vmatprep.subr.mxu0 %v1791_v1  ;;  %v1451_v1 = vld [vmem:[%s2275_s6] ss:$0 sm:$0xff] }
 0x70b   : > { %1633 = vmatpush3.msra.mxu0 %v1198_v0 }
 0x7c4   : > { %v1189_v2 = vpop.f32.mrf.mxu0 }
 0x7c5   : > { %1194 = vrot.lane.b32.xlu1 %v1189_v2, %s1803_s20  ;;  %s1717_s20 = sshll.u32 %s1804_s27, 4  ;;  %s1718_s20 = int_to_ptr.vmem [resolvable:$false] %s1717_s20 }
 0x7c6   : > { %v1625_v3 = vpop.f32.mrf.mxu0  ;;  %s1719_s12 = scalar_lea.vmem %s1718_s20, 256  ;;  %p1720_p1 = scmp.lt.s32.totalorder %s1300_s8, %s1718_s20 }
 0x7c7   : > { %p1721_p2 = scmp.lt.s32.totalorder %s1719_s12, %s1713_s19 }
 0x7c9   : > { %p1722_p3 = por %p1721_p2, %p1720_p1 }
 0x7cb   : > { %p1723_p5 = pnand %p1722_p3, %p1716_p0 }
 0x837   : > { %v1195_v4 = vpop.permute.xlu1 %1194 }
 0x838   : > { %v1197_v5 = vsel %vm371_vm2, %v2176_v28, %v1195_v4 }
 0x839   : > { %1635 = vmatmul.mubr.msk.f32.vlgmr.msra.gmra.mxu0 %vm297_vm1, %v1197_v5 }
 0x8f9   : > { %v1279_v6 = vpop.f32.mrf.mxu0 }
 0x8fa   : > { %v1280_v7 = vadd.f32 %v1451_v1, %v1279_v6 }
 0x8fb   : > { %v1636_v8 = vpop.f32.mrf.mxu0 }
 0x8fc   : > { %1283 = vst.msk [vmem:[%s283_s30] sm:$0xff] %vm297_vm1, %v1280_v7 }
 0x8fd   : > { %1726 = shalt.err (!%p1723_p5)
}
 0x8fe   : > { %s1727_s21 = scalar_lea.hbm %s2228_s15, 128  ;;  %s1731_s23 = scalar_lea.hbm %s2276_s7, 256 }
 0x8ff   : > { %p1728_p6 = scmp.ne.s32.totalorder %s2228_s15, %s1727_s21  ;;  %p1732_p10 = scmp.lt.s32.totalorder %s2228_s15, %s2276_s7 }
 0x900   : > { %p1733_p11 = scmp.lt.s32.totalorder %s1731_s23, %s1727_s21 }
 0x901   : > { %p1729_p7 = pnand %p1728_p6, %p1885_p4 }
 0x902   : > { %p1734_p12 = por %p1733_p11, %p1732_p10 }
 0x903   : > { %p1730_p9 = pneg %p1729_p7 }
 0x905   : > { %p1735_p13 = pnand %p1734_p12, %p1730_p9 }
 0x907   : > { %1738 = shalt.err (!%p1735_p13)
}
 0x908   : > { %1637 = dma.vmem_to_hbm [thread:$0]  (%p1885_p4), %s1300_s8, 128, %s2228_s15, %s1285_s18  }
 0x909 PF: > { %p1643_p0 = scmp.ge.s32.totalorder %s1789_s29, 2  ;;  %s1311_s16 = sand.u32 1, %s1769_s24  }
 0x90a   : > { %s1312_s19 = scalar_lea.sflag [#allocation6], %s1311_s16 }
 0x90b   : > { %p1640_p1 = pnand %p1643_p0, %p1892_p8 }
 0x90d   : > { %p1641_p2 = pneg %p1640_p1 }
 0x90f   : > { %1764 = dma.done.wait (%p1641_p2), %s1312_s19, 128  }
 0x910   : > { %1766 = vsyncadd (%p1641_p2), %s1312_s19, 4294967168  ;;  %s20_s29 = sadd.s32 1, %s1789_s29   ;;  %s2285_s24 = smov %s1773_s25 }
 0x911   : > { %p17_p3 = scmp.ge.s32.totalorder %s20_s29, 4   ;;  %s2286_s25 = smov %s1777_s26 }
 0x912   : > { %s2287_s26 = smov %s1898_s14  ;;  %s2288_s27 = smov %s1785_s28 }
 0x913   : > { %s2289_s28 = smov %s2291_s9  ;;  %19 = sbr.rel (!%p17_p3) target bundleno = 4 (0x4), region = 99 }
 0x918   :  { %1317 = vsyncpa [#allocation6], 1 }
 0x919   :  { %1319 = vsyncpa [#allocation6 + $0x1], 1 }

</bundles_post_ra>
